<compile_context>
chip_gen: v7x
topology: tpu7x:2x2x1
jax: 0.10.0
libtpu: 0.0.40
codegen_flags: <defaults>
</compile_context>

<pallas_src>
import functools

import jax
import jax.numpy as jnp
from jax.experimental import pallas as pl
from jax.experimental.pallas import tpu as pltpu


# ----------------------------------------------------------------------------
# KAT_Group rational-function coefficients, order (5, 4), deterministic init.
#   y = P(x) / (1 + |b1*x + b2*x^2 + b3*x^3 + b4*x^4|)
#   P(x) = a0 + a1*x + ... + a5*x^5
# 'identity' mode init reproduces y = x exactly (folded away below);
# 'gelu' mode is the KAT deterministic rational (5,4) fit of GELU.
# ----------------------------------------------------------------------------
_GELU_NUM = (-0.0012423594497499122, 0.5080497063245629, 0.41586363182937475,
             0.13022718688035761, 0.024355900098993424, 0.00290283948155535)
_GELU_DEN = (-0.06675015696494944, 0.17927646217001553, 0.03746682605496631,
             1.6561610853276082e-10)

NUM_GROUPS = 8   # KAT_Group default
OUT_PAD = 128    # fc3 output columns padded to one full lane tile


def _round_up(x, m):
    return (x + m - 1) // m * m


def _device_kind():
    try:
        return jax.devices()[0].device_kind.lower()
    except Exception:
        return ""


# ----------------------------------------------------------------------------
# Kernel
# ----------------------------------------------------------------------------
def _rational_gelu(x, den_ref):
    """KAT rational(5,4) GELU activation.

    x:       (TB, D) f32
    den_ref: (4, D)  f32 rows b1..b4 (per-channel, expanded from per-group)
    Numerator a0..a5 is shared across channels -> baked-in scalar constants.
    """
    a0, a1, a2, a3, a4, a5 = _GELU_NUM
    # Horner: ((((a5*x + a4)*x + a3)*x + a2)*x + a1)*x + a0
    p = a5 * x + a4
    p = p * x + a3
    p = p * x + a2
    p = p * x + a1
    p = p * x + a0
    # Denominator poly (without constant): (((b4*x + b3)*x + b2)*x + b1) * x
    q = den_ref[3:4, :]
    q = q * x + den_ref[2:3, :]
    q = q * x + den_ref[1:2, :]
    q = q * x + den_ref[0:1, :]
    q = 1.0 + jnp.abs(q * x)
    # Divide on the EUP slot instead of the VALU.
    return p * pl.reciprocal(q, approx=True)


def _disc_kernel(den2_ref, w1_ref, b1_ref, w2_ref, b2_ref, w3_ref, b3_ref,
                 x_ref, out_ref):
    # fc1: (TB, K) @ (K, 512) -- bf16 MXU matmul, f32 accumulate.
    # astype is a no-op if the caller already supplies bf16 activations.
    x = x_ref[...].astype(jnp.bfloat16)
    h = jnp.dot(x, w1_ref[...], preferred_element_type=jnp.float32) + b1_ref[...]

    # act1: KAT_Group(mode='identity') is exactly y = x at default init -> no-op.

    # fc2: (TB, 512) @ (512, 256)
    h = jnp.dot(h.astype(jnp.bfloat16), w2_ref[...],
                preferred_element_type=jnp.float32) + b2_ref[...]

    # act2: KAT_Group(mode='gelu') rational (5, 4)
    h = _rational_gelu(h, den2_ref)

    # fc3: (TB, 256) @ (256, 128)  (output columns padded; real logit = col 0)
    h = jnp.dot(h.astype(jnp.bfloat16), w3_ref[...],
                preferred_element_type=jnp.float32) + b3_ref[...]

    # Sigmoid via EUP exp + approx reciprocal; bf16 writeback (lane-dense).
    out_ref[...] = pl.reciprocal(1.0 + jnp.exp(-h), approx=True).astype(out_ref.dtype)


# ----------------------------------------------------------------------------
# Parameter construction (deterministic stand-in for the PyTorch module init)
# ----------------------------------------------------------------------------
def _linear_init(key, in_f, out_f):
    """nn.Linear default init (uniform +-1/sqrt(in_features))."""
    kw, kb = jax.random.split(key)
    bound = 1.0 / jnp.sqrt(jnp.float32(in_f))
    w = jax.random.uniform(kw, (in_f, out_f), jnp.float32, -bound, bound)
    b = jax.random.uniform(kb, (1, out_f), jnp.float32, -bound, bound)
    return w, b


def _expand_den(den_groups, dim, num_groups):
    """Per-group denominator (G, 4) -> per-channel rows (4, dim)."""
    den_groups = jnp.asarray(den_groups, jnp.float32)
    assert dim % num_groups == 0, "feature dim must be divisible by NUM_GROUPS"
    group_size = dim // num_groups
    return jnp.repeat(den_groups.T, group_size, axis=1)  # (4, dim)


def make_kan_discriminator_params(key, img_dim):
    # TODO(synk): coefficients are the KAT_Group deterministic default init;
    # trained/loaded rational coefficients would need to be threaded through.
    k1, k2, k3 = jax.random.split(key, 3)
    w1, b1 = _linear_init(k1, img_dim, 512)
    w2, b2 = _linear_init(k2, 512, 256)
    w3, b3 = _linear_init(k3, 256, 1)

    # Pad fc3 output to 128 lanes (lane-dense stores); real logit is column 0.
    w3p = jnp.zeros((256, OUT_PAD), jnp.float32).at[:, :1].set(w3)
    b3p = jnp.zeros((1, OUT_PAD), jnp.float32).at[:, :1].set(b3)

    # act2 (gelu) per-group denominator expanded to per-channel (4, 256) rows.
    den2 = _expand_den(
        jnp.tile(jnp.asarray(_GELU_DEN, jnp.float32), (NUM_GROUPS, 1)),
        256, NUM_GROUPS)

    # Weights stored bf16 (MXU-native, half the resident VMEM); biases/coeffs f32.
    return dict(
        w1=w1.astype(jnp.bfloat16), b1=b1,       # (img_dim, 512): no K padding
        w2=w2.astype(jnp.bfloat16), b2=b2,
        w3=w3p.astype(jnp.bfloat16), b3=b3p,
        den2=den2,
    )


# ----------------------------------------------------------------------------
# Forward wrapper
# ----------------------------------------------------------------------------
def _pick_batch_tile(B, batch_tile, device_kind):
    is_v5e = ("v5 lite" in device_kind) or ("v5e" in device_kind) or \
             ("v5litepod" in device_kind)
    is_v7 = "v7" in device_kind

    # v5e: cap the tile at 512 so the f32 intermediates + double-buffered x tile
    # stay well under its 16 MiB scoped-VMEM default (v6e/v7x defaults are 32 MiB).
    eff_tile = min(batch_tile, 512) if is_v5e else batch_tile

    tb = min(eff_tile, B)
    # Only v7x has 2 TensorCores per chip: split a single-tile batch into two
    # grid steps (so the "parallel" batch axis can shard across cores), but only
    # when each half still fills the MXU with >= 256 rows.  On v5e/v6e a split
    # would just halve the M fill and double per-step overhead.
    if is_v7 and tb == B and B >= 512:
        tb = _round_up((B + 1) // 2, 8)
    if tb < B:
        tb = _round_up(tb, 8)   # partial tiles need the sublane-divisible shape
    return tb


@functools.partial(jax.jit, static_argnames=("batch_tile",))
def kan_discriminator_forward(params, x, batch_tile=1024):
    B, img_dim = x.shape
    p = params
    assert p["w1"].shape[0] == img_dim
    out_pad = p["w3"].shape[1]

    tb = _pick_batch_tile(B, batch_tile, _device_kind())
    grid = (pl.cdiv(B, tb),)

    full = lambda a: pl.BlockSpec(a.shape, lambda i: (0,) * a.ndim)
    in_specs = [
        full(p["den2"]),
        full(p["w1"]), full(p["b1"]),
        full(p["w2"]), full(p["b2"]),
        full(p["w3"]), full(p["b3"]),
        # x is NOT padded: last dim == full array dim satisfies the layout rule.
        pl.BlockSpec((tb, img_dim), lambda i: (i, 0)),
    ]
    out_specs = pl.BlockSpec((tb, out_pad), lambda i: (i, 0))

    out = pl.pallas_call(
        _disc_kernel,
        out_shape=jax.ShapeDtypeStruct((B, out_pad), jnp.bfloat16),
        grid_spec=pltpu.PrefetchScalarGridSpec(
            num_scalar_prefetch=0,
            grid=grid,
            in_specs=in_specs,
            out_specs=out_specs,
        ),
        compiler_params=pltpu.CompilerParams(
            dimension_semantics=("parallel",)),
    )(p["den2"], p["w1"], p["b1"], p["w2"], p["b2"], p["w3"], p["b3"], x)

    # Real logit is column 0 of the lane-padded output; upcast for the caller.
    return out[:, :1].astype(jnp.float32)


# ----------------------------------------------------------------------------
# Pure-JAX reference (same math, f32 matmuls, exact division) for sanity check.
# ----------------------------------------------------------------------------
def _rational_gelu_ref(x, den_c):
    a0, a1, a2, a3, a4, a5 = _GELU_NUM
    p = a5 * x + a4
    p = p * x + a3
    p = p * x + a2
    p = p * x + a1
    p = p * x + a0
    q = den_c[3][None, :]
    q = q * x + den_c[2][None, :]
    q = q * x + den_c[1][None, :]
    q = q * x + den_c[0][None, :]
    return p / (1.0 + jnp.abs(q * x))


def kan_discriminator_ref(params, x):
    p = params
    xf = x.astype(jnp.float32)
    h = xf @ p["w1"].astype(jnp.float32) + p["b1"]
    # act1: identity
    h = h @ p["w2"].astype(jnp.float32) + p["b2"]
    h = _rational_gelu_ref(h, p["den2"])
    h = h @ p["w3"].astype(jnp.float32) + p["b3"]
    return jax.nn.sigmoid(h)[:, :1]


if __name__ == "__main__":
    img_dim, batch = 784, 64   # e.g. flattened 28x28 images

    key = jax.random.PRNGKey(0)
    k_params, k_x = jax.random.split(key)
    params = make_kan_discriminator_params(k_params, img_dim)
    x = jax.random.normal(k_x, (batch, img_dim), jnp.float32)

    out = jax.block_until_ready(kan_discriminator_forward(params, x))
    ref = jax.block_until_ready(kan_discriminator_ref(params, x))

    assert out.shape == (batch, 1)
    assert jnp.all(jnp.isfinite(out))
    assert jnp.allclose(out, ref, atol=2e-2, rtol=2e-2)

    print("KERNEL_OK")
</pallas_src>

<mosaic_0001>
module attributes {stable_mosaic.version = 11 : i64} {
  func.func @_disc_kernel(%arg0: i32, %arg1: memref<4x256xf32, #tpu.memory_space<vmem>>, %arg2: memref<784x512xbf16, #tpu.memory_space<vmem>>, %arg3: memref<1x512xf32, #tpu.memory_space<vmem>>, %arg4: memref<512x256xbf16, #tpu.memory_space<vmem>>, %arg5: memref<1x256xf32, #tpu.memory_space<vmem>>, %arg6: memref<256x128xbf16, #tpu.memory_space<vmem>>, %arg7: memref<1x128xf32, #tpu.memory_space<vmem>>, %arg8: memref<64x784xf32, #tpu.memory_space<vmem>>, %arg9: memref<64x128xbf16, #tpu.memory_space<vmem>>) attributes {dimension_semantics = [#tpu.dimension_semantics<parallel>], iteration_bounds = array<i64: 1>, scalar_prefetch = 0 : i64, scratch_operands = 0 : i64, tpu.core_type = #tpu.core_type<tc>, window_params = [{pipeline_mode = #tpu.pipeline_mode<synchronous>, transform_indices = @transform_0, window_bounds = array<i64: 4, 256>}, {pipeline_mode = #tpu.pipeline_mode<synchronous>, transform_indices = @transform_1, window_bounds = array<i64: 784, 512>}, {pipeline_mode = #tpu.pipeline_mode<synchronous>, transform_indices = @transform_2, window_bounds = array<i64: 1, 512>}, {pipeline_mode = #tpu.pipeline_mode<synchronous>, transform_indices = @transform_3, window_bounds = array<i64: 512, 256>}, {pipeline_mode = #tpu.pipeline_mode<synchronous>, transform_indices = @transform_4, window_bounds = array<i64: 1, 256>}, {pipeline_mode = #tpu.pipeline_mode<synchronous>, transform_indices = @transform_5, window_bounds = array<i64: 256, 128>}, {pipeline_mode = #tpu.pipeline_mode<synchronous>, transform_indices = @transform_6, window_bounds = array<i64: 1, 128>}, {transform_indices = @transform_7, window_bounds = array<i64: 64, 784>}, {transform_indices = @transform_8, window_bounds = array<i64: 64, 128>}]} {
    %c0 = arith.constant 0 : index
    %c0_0 = arith.constant 0 : index
    %0 = vector.load %arg8[%c0, %c0_0] : memref<64x784xf32, #tpu.memory_space<vmem>>, vector<64x784xf32>
    %1 = arith.truncf %0 : vector<64x784xf32> to vector<64x784xbf16>
    %c0_1 = arith.constant 0 : index
    %c0_2 = arith.constant 0 : index
    %2 = vector.load %arg2[%c0_1, %c0_2] : memref<784x512xbf16, #tpu.memory_space<vmem>>, vector<784x512xbf16>
    %cst = arith.constant dense<0.000000e+00> : vector<64x512xf32>
    %3 = tpu.matmul %1, %2, %cst {dimension_numbers = #tpu.dot_dimension_numbers<[1], [0], [0], [1], [0, 0, 1, 1], [], []>} : vector<64x784xbf16>, vector<784x512xbf16>, vector<64x512xf32> -> vector<64x512xf32>
    %c0_3 = arith.constant 0 : index
    %c0_4 = arith.constant 0 : index
    %4 = vector.load %arg3[%c0_3, %c0_4] : memref<1x512xf32, #tpu.memory_space<vmem>>, vector<1x512xf32>
    %5 = vector.broadcast %4 : vector<1x512xf32> to vector<64x512xf32>
    %6 = arith.addf %3, %5 : vector<64x512xf32>
    %7 = arith.truncf %6 : vector<64x512xf32> to vector<64x512xbf16>
    %c0_5 = arith.constant 0 : index
    %c0_6 = arith.constant 0 : index
    %8 = vector.load %arg4[%c0_5, %c0_6] : memref<512x256xbf16, #tpu.memory_space<vmem>>, vector<512x256xbf16>
    %cst_7 = arith.constant dense<0.000000e+00> : vector<64x256xf32>
    %9 = tpu.matmul %7, %8, %cst_7 {dimension_numbers = #tpu.dot_dimension_numbers<[1], [0], [0], [1], [0, 0, 1, 1], [], []>} : vector<64x512xbf16>, vector<512x256xbf16>, vector<64x256xf32> -> vector<64x256xf32>
    %c0_8 = arith.constant 0 : index
    %c0_9 = arith.constant 0 : index
    %10 = vector.load %arg5[%c0_8, %c0_9] : memref<1x256xf32, #tpu.memory_space<vmem>>, vector<1x256xf32>
    %11 = vector.broadcast %10 : vector<1x256xf32> to vector<64x256xf32>
    %12 = arith.addf %9, %11 : vector<64x256xf32>
    %cst_10 = arith.constant 0.00290283957 : f32
    %13 = vector.broadcast %cst_10 : f32 to vector<64x256xf32>
    %14 = arith.mulf %13, %12 : vector<64x256xf32>
    %cst_11 = arith.constant 2.435590e-02 : f32
    %15 = vector.broadcast %cst_11 : f32 to vector<64x256xf32>
    %16 = arith.addf %14, %15 : vector<64x256xf32>
    %17 = arith.mulf %16, %12 : vector<64x256xf32>
    %cst_12 = arith.constant 0.130227193 : f32
    %18 = vector.broadcast %cst_12 : f32 to vector<64x256xf32>
    %19 = arith.addf %17, %18 : vector<64x256xf32>
    %20 = arith.mulf %19, %12 : vector<64x256xf32>
    %cst_13 = arith.constant 0.415863633 : f32
    %21 = vector.broadcast %cst_13 : f32 to vector<64x256xf32>
    %22 = arith.addf %20, %21 : vector<64x256xf32>
    %23 = arith.mulf %22, %12 : vector<64x256xf32>
    %cst_14 = arith.constant 0.508049726 : f32
    %24 = vector.broadcast %cst_14 : f32 to vector<64x256xf32>
    %25 = arith.addf %23, %24 : vector<64x256xf32>
    %26 = arith.mulf %25, %12 : vector<64x256xf32>
    %cst_15 = arith.constant -0.0012423594 : f32
    %27 = vector.broadcast %cst_15 : f32 to vector<64x256xf32>
    %28 = arith.addf %26, %27 : vector<64x256xf32>
    %c3 = arith.constant 3 : index
    %c0_16 = arith.constant 0 : index
    %29 = vector.load %arg1[%c3, %c0_16] : memref<4x256xf32, #tpu.memory_space<vmem>>, vector<1x256xf32>
    %30 = vector.broadcast %29 : vector<1x256xf32> to vector<64x256xf32>
    %31 = arith.mulf %30, %12 : vector<64x256xf32>
    %c2 = arith.constant 2 : index
    %c0_17 = arith.constant 0 : index
    %32 = vector.load %arg1[%c2, %c0_17] : memref<4x256xf32, #tpu.memory_space<vmem>>, vector<1x256xf32>
    %33 = vector.broadcast %32 : vector<1x256xf32> to vector<64x256xf32>
    %34 = arith.addf %31, %33 : vector<64x256xf32>
    %35 = arith.mulf %34, %12 : vector<64x256xf32>
    %c1 = arith.constant 1 : index
    %c0_18 = arith.constant 0 : index
    %36 = vector.load %arg1[%c1, %c0_18] : memref<4x256xf32, #tpu.memory_space<vmem>>, vector<1x256xf32>
    %37 = vector.broadcast %36 : vector<1x256xf32> to vector<64x256xf32>
    %38 = arith.addf %35, %37 : vector<64x256xf32>
    %39 = arith.mulf %38, %12 : vector<64x256xf32>
    %c0_19 = arith.constant 0 : index
    %c0_20 = arith.constant 0 : index
    %40 = vector.load %arg1[%c0_19, %c0_20] : memref<4x256xf32, #tpu.memory_space<vmem>>, vector<1x256xf32>
    %41 = vector.broadcast %40 : vector<1x256xf32> to vector<64x256xf32>
    %42 = arith.addf %39, %41 : vector<64x256xf32>
    %43 = arith.mulf %42, %12 : vector<64x256xf32>
    %44 = math.absf %43 : vector<64x256xf32>
    %cst_21 = arith.constant 1.000000e+00 : f32
    %45 = vector.broadcast %cst_21 : f32 to vector<64x256xf32>
    %46 = arith.addf %45, %44 : vector<64x256xf32>
    %47 = tpu.reciprocal %46 {approx = true} : vector<64x256xf32> -> vector<64x256xf32>
    %48 = arith.mulf %28, %47 : vector<64x256xf32>
    %49 = arith.truncf %48 : vector<64x256xf32> to vector<64x256xbf16>
    %c0_22 = arith.constant 0 : index
    %c0_23 = arith.constant 0 : index
    %50 = vector.load %arg6[%c0_22, %c0_23] : memref<256x128xbf16, #tpu.memory_space<vmem>>, vector<256x128xbf16>
    %cst_24 = arith.constant dense<0.000000e+00> : vector<64x128xf32>
    %51 = tpu.matmul %49, %50, %cst_24 {dimension_numbers = #tpu.dot_dimension_numbers<[1], [0], [0], [1], [0, 0, 1, 1], [], []>} : vector<64x256xbf16>, vector<256x128xbf16>, vector<64x128xf32> -> vector<64x128xf32>
    %c0_25 = arith.constant 0 : index
    %c0_26 = arith.constant 0 : index
    %52 = vector.load %arg7[%c0_25, %c0_26] : memref<1x128xf32, #tpu.memory_space<vmem>>, vector<1x128xf32>
    %53 = vector.broadcast %52 : vector<1x128xf32> to vector<64x128xf32>
    %54 = arith.addf %51, %53 : vector<64x128xf32>
    %cst_27 = arith.constant 0.000000e+00 : f32
    %55 = vector.broadcast %cst_27 : f32 to vector<64x128xf32>
    %56 = arith.subf %55, %54 : vector<64x128xf32>
    %57 = math.exp %56 : vector<64x128xf32>
    %cst_28 = arith.constant 1.000000e+00 : f32
    %58 = vector.broadcast %cst_28 : f32 to vector<64x128xf32>
    %59 = arith.addf %58, %57 : vector<64x128xf32>
    %60 = tpu.reciprocal %59 {approx = true} : vector<64x128xf32> -> vector<64x128xf32>
    %61 = arith.truncf %60 : vector<64x128xf32> to vector<64x128xbf16>
    %c0_29 = arith.constant 0 : index
    %c0_30 = arith.constant 0 : index
    %62 = vector.load %arg9[%c0_29, %c0_30] : memref<64x128xbf16, #tpu.memory_space<vmem>>, vector<64x128xbf16>
    tpu.vector_store %arg9[%c0_29, %c0_30], %61 {strides = array<i32>} : memref<64x128xbf16, #tpu.memory_space<vmem>>, vector<64x128xbf16>,
    return
  }
  func.func @transform_0(%arg0: i32) -> (i32, i32) {
    %c0_i32 = arith.constant 0 : i32
    %c0_i32_0 = arith.constant 0 : i32
    %c0_i32_1 = arith.constant 0 : i32
    return %c0_i32, %c0_i32_0 : i32, i32
  }
  func.func @transform_1(%arg0: i32) -> (i32, i32) {
    %c0_i32 = arith.constant 0 : i32
    %c0_i32_0 = arith.constant 0 : i32
    %c0_i32_1 = arith.constant 0 : i32
    return %c0_i32, %c0_i32_0 : i32, i32
  }
  func.func @transform_2(%arg0: i32) -> (i32, i32) {
    %c0_i32 = arith.constant 0 : i32
    %c0_i32_0 = arith.constant 0 : i32
    %c0_i32_1 = arith.constant 0 : i32
    return %c0_i32, %c0_i32_0 : i32, i32
  }
  func.func @transform_3(%arg0: i32) -> (i32, i32) {
    %c0_i32 = arith.constant 0 : i32
    %c0_i32_0 = arith.constant 0 : i32
    %c0_i32_1 = arith.constant 0 : i32
    return %c0_i32, %c0_i32_0 : i32, i32
  }
  func.func @transform_4(%arg0: i32) -> (i32, i32) {
    %c0_i32 = arith.constant 0 : i32
    %c0_i32_0 = arith.constant 0 : i32
    %c0_i32_1 = arith.constant 0 : i32
    return %c0_i32, %c0_i32_0 : i32, i32
  }
  func.func @transform_5(%arg0: i32) -> (i32, i32) {
    %c0_i32 = arith.constant 0 : i32
    %c0_i32_0 = arith.constant 0 : i32
    %c0_i32_1 = arith.constant 0 : i32
    return %c0_i32, %c0_i32_0 : i32, i32
  }
  func.func @transform_6(%arg0: i32) -> (i32, i32) {
    %c0_i32 = arith.constant 0 : i32
    %c0_i32_0 = arith.constant 0 : i32
    %c0_i32_1 = arith.constant 0 : i32
    return %c0_i32, %c0_i32_0 : i32, i32
  }
  func.func @transform_7(%arg0: i32) -> (i32, i32) {
    %c0_i32 = arith.constant 0 : i32
    %c0_i32_0 = arith.constant 0 : i32
    return %arg0, %c0_i32 : i32, i32
  }
  func.func @transform_8(%arg0: i32) -> (i32, i32) {
    %c0_i32 = arith.constant 0 : i32
    %c0_i32_0 = arith.constant 0 : i32
    return %arg0, %c0_i32 : i32, i32
  }
}

</mosaic_0001>

<bundles_post_ra>
// kernel: kan_discriminator_forward.1
= control target key start
LH: loop header
LB: loop body
LE: loop exit
PB: predicated region body
PF: predicated region fallthrough
CT: control target
= control target key end

     0   :  { %13 = vsyncpa [#allocation3], 0  ;;  %s5006_s0 = inlined_call_operand.vmem [shape: f32[4,256], index: 0, kind: input, shape index: {}]   ;;  %s5007_s1 = inlined_call_operand.hbm [shape: bf16[784,512], index: 1, kind: input, shape index: {}]   ;;  %s5008_s2 = inlined_call_operand.hbm [shape: f32[1,512], index: 2, kind: input, shape index: {}]   ;;  %s5009_s3 = inlined_call_operand.hbm [shape: bf16[512,256], index: 3, kind: input, shape index: {}]   ;;  %s5010_s4 = inlined_call_operand.vmem [shape: f32[1,256], index: 4, kind: input, shape index: {}]   ;;  %s5011_s5 = inlined_call_operand.hbm [shape: bf16[256,128], index: 5, kind: input, shape index: {}]   ;;  %s5012_s6 = inlined_call_operand.vmem [shape: f32[1,128], index: 6, kind: input, shape index: {}]   ;;  %s5013_s7 = inlined_call_operand.hbm [shape: f32[64,784], index: 7, kind: input, shape index: {}]   ;;  %s5014_s8 = inlined_call_operand.vmem [shape: bf16[64,128], index: 8, kind: output, shape index: {}]  }
   0x1   :  { %14 = vsyncpa [#allocation5], 0 }
   0x2   :  { %15 = vsyncpa [#allocation8], 0  ;;  %s4358_s27 = smov [#allocation4]   ;;  %s4359_s29 = smov [#allocation7]  }
   0x3   :  { %s36_s28 = sshll.u32 %s4358_s27, 4  ;;  %s59_s30 = sshll.u32 %s4359_s29, 4  ;;  %s37_s28 = int_to_ptr.vmem [resolvable:$true] %s36_s28  ;;  %s4417_s30 = int_to_ptr.vmem [resolvable:$true] %s59_s30 }
   0x4   :  { %s4242_s11 = scalar_lea.hbm %s5008_s2, 64 }
   0x5   :  { %p4243_p0 = scmp.ne.s32.totalorder %s5008_s2, %s4242_s11  ;;  %p4246_p1 = scmp.lt.u32.totalorder %s4242_s11, %s5008_s2 }
   0x7   :  { %p4248_p2 = pnand %p4246_p1, %p4243_p0 }
   0x9   :  { %4251 = shalt.err (!%p4248_p2)
}
   0xa   :  { %s4252_s16 = scalar_lea.vmem %s37_s28, 64  ;;  %p4257_p4 = scmp.lt.s32.totalorder %s37_s28, %s37_s28 }
   0xb   :  { %p4253_p3 = scmp.ne.s32.totalorder %s37_s28, %s4252_s16  ;;  %p4258_p5 = scmp.lt.s32.totalorder %s4252_s16, %s4252_s16 }
   0xd   :  { %p4259_p6 = por %p4258_p5, %p4257_p4 }
   0xf   :  { %p4260_p7 = pnand %p4259_p6, %p4253_p3 }
  0x11   :  { %4263 = shalt.err (!%p4260_p7)
}
  0x12   :  { %39 = dma.hbm_to_vmem [thread:$0]  %s5008_s2, 64, %s37_s28, [#allocation5]  }
  0x13   :  { %s4264_s21 = scalar_lea.hbm %s5011_s5, 2048 }
  0x14   :  { %p4265_p8 = scmp.ne.s32.totalorder %s5011_s5, %s4264_s21  ;;  %p4268_p9 = scmp.lt.u32.totalorder %s4264_s21, %s5011_s5 }
  0x16   :  { %p4270_p10 = pnand %p4268_p9, %p4265_p8 }
  0x18   :  { %4273 = shalt.err (!%p4270_p10)
}
  0x19   :  { %s4274_s26 = scalar_lea.vmem %s4417_s30, 2048  ;;  %p4279_p12 = scmp.lt.s32.totalorder %s4417_s30, %s4417_s30 }
  0x1a   :  { %p4275_p11 = scmp.ne.s32.totalorder %s4417_s30, %s4274_s26  ;;  %p4280_p13 = scmp.lt.s32.totalorder %s4274_s26, %s4274_s26 }
  0x1c   :  { %p4281_p0 = por %p4280_p13, %p4279_p12 }
  0x1e   :  { %p4282_p1 = pnand %p4281_p0, %p4275_p11 }
  0x20   :  { %4285 = shalt.err (!%p4282_p1)
}
  0x21   :  { %s4360_s2 = smov 64   ;;  %s4361_s27 = smov 4  }
  0x22   :  { %65 = dma.hbm_to_vmem [thread:$0]  %s5011_s5, 2048, %s4417_s30, [#allocation8], %s4360_s2, %s4360_s2, %s4361_s27  }
  0x23   :  { %s4362_s9 = smov [#allocation2]   ;;  %s4286_s13 = scalar_lea.hbm %s5007_s1, 25088 }
  0x24   :  { %s23_s10 = sshll.u32 %s4362_s9, 4  ;;  %p4287_p2 = scmp.ne.s32.totalorder %s5007_s1, %s4286_s13  ;;  %s24_s10 = int_to_ptr.vmem [resolvable:$true] %s23_s10 }
  0x25   :  { %p4290_p3 = scmp.lt.u32.totalorder %s4286_s13, %s5007_s1 }
  0x27   :  { %p4292_p4 = pnand %p4290_p3, %p4287_p2 }
  0x29   :  { %4295 = shalt.err (!%p4292_p4)
}
  0x2a   :  { %s4296_s18 = scalar_lea.vmem %s24_s10, 25088  ;;  %p4301_p6 = scmp.lt.s32.totalorder %s24_s10, %s24_s10 }
  0x2b   :  { %p4297_p5 = scmp.ne.s32.totalorder %s24_s10, %s4296_s18  ;;  %p4302_p7 = scmp.lt.s32.totalorder %s4296_s18, %s4296_s18 }
  0x2d   :  { %p4303_p8 = por %p4302_p7, %p4301_p6 }
  0x2f   :  { %p4304_p9 = pnand %p4303_p8, %p4297_p5 }
  0x31   :  { %4307 = shalt.err (!%p4304_p9)
}
  0x32   :  { %s4363_s5 = smov 256   ;;  %s4364_s30 = smov 16  }
  0x33   :  { %29 = dma.hbm_to_vmem [thread:$0]  %s5007_s1, 25088, %s24_s10, [#allocation3], %s4363_s5, %s4363_s5, %s4364_s30  }
  0x34   :  { %s4365_s21 = smov [#allocation6]   ;;  %s4308_s25 = scalar_lea.hbm %s5009_s3, 8192 }
  0x35   :  { %s45_s22 = sshll.u32 %s4365_s21, 4  ;;  %p4309_p10 = scmp.ne.s32.totalorder %s5009_s3, %s4308_s25  ;;  %s46_s22 = int_to_ptr.vmem [resolvable:$true] %s45_s22 }
  0x36   :  { %p4312_p11 = scmp.lt.u32.totalorder %s4308_s25, %s5009_s3 }
  0x38   :  { %p4314_p12 = pnand %p4312_p11, %p4309_p10 }
  0x3a   :  { %4317 = shalt.err (!%p4314_p12)
}
  0x3b   :  { %s4318_s29 = scalar_lea.vmem %s46_s22, 8192  ;;  %p4323_p0 = scmp.lt.s32.totalorder %s46_s22, %s46_s22 }
  0x3c   :  { %p4319_p13 = scmp.ne.s32.totalorder %s46_s22, %s4318_s29  ;;  %p4324_p1 = scmp.lt.s32.totalorder %s4318_s29, %s4318_s29 }
  0x3e   :  { %p4325_p2 = por %p4324_p1, %p4323_p0 }
  0x40   :  { %p4326_p3 = pnand %p4325_p2, %p4319_p13 }
  0x42   :  { %4329 = shalt.err (!%p4326_p3)
}
  0x43   :  { %s4366_s1 = smov 128   ;;  %s4367_s9 = smov 8  }
  0x44   :  { %51 = dma.hbm_to_vmem [thread:$0]  %s5009_s3, 8192, %s46_s22, [#allocation5], %s4366_s1, %s4366_s1, %s4367_s9  }
  0x45   :  { %s4368_s12 = smov [#allocation9]   ;;  %s4330_s16 = scalar_lea.hbm %s5013_s7, 7168 }
  0x46   :  { %s73_s13 = sshll.u32 %s4368_s12, 4  ;;  %p4331_p4 = scmp.ne.s32.totalorder %s5013_s7, %s4330_s16  ;;  %s74_s13 = int_to_ptr.vmem [resolvable:$true] %s73_s13 }
  0x47   :  { %p4334_p5 = scmp.lt.u32.totalorder %s4330_s16, %s5013_s7 }
  0x49   :  { %p4336_p6 = pnand %p4334_p5, %p4331_p4 }
  0x4b   :  { %4339 = shalt.err (!%p4336_p6)
}
  0x4c   :  { %s4340_s19 = scalar_lea.vmem %s74_s13, 7168  ;;  %p4345_p8 = scmp.lt.s32.totalorder %s74_s13, %s74_s13 }
  0x4d   :  { %p4341_p7 = scmp.ne.s32.totalorder %s74_s13, %s4340_s19  ;;  %p4346_p9 = scmp.lt.s32.totalorder %s4340_s19, %s4340_s19 }
  0x4f   :  { %p4347_p10 = por %p4346_p9, %p4345_p8 }
  0x51   :  { %p4348_p11 = pnand %p4347_p10, %p4341_p7 }
  0x53   :  { %4351 = shalt.err (!%p4348_p11)
}
  0x54   :  { %s4369_s3 = smov 896   ;;  %s4370_s20 = smov 56  }
  0x55   :  { %79 = dma.hbm_to_vmem [thread:$0]  %s5013_s7, 7168, %s74_s13, [#allocation8], %s4369_s3, %s4369_s3, %s4370_s20  }
  0x56   :  { %4352 = dma.done.wait [#allocation3], 25088  }
  0x57   :  { %4353 = vsyncadd [#allocation3], 4294942208 }
  0x58   :  { %4354 = dma.done.wait [#allocation5], 8256  }
  0x59   :  { %4355 = vsyncadd [#allocation5], 4294959040 }
  0x5a   :  { %4356 = dma.done.wait [#allocation8], 9216  }
  0x5b   :  { %4357 = vsyncadd [#allocation8], 4294958080  ;;  %v3772_v0 = vld [vmem:[#allocation2 + $0x4] ss:$16 sps:$4 sm:$0xff]   ;;  %v3776_v2 = vld [vmem:[#allocation2] ss:$16 sps:$4 sm:$0xff]  }
  0x5c   :  { %v3774_v1 = vld [vmem:[#allocation2 + $0x204] ss:$16 sps:$4 sm:$0xff]   ;;  %1391 = vmatprep.subr.bf16.mxu1 %v3772_v0  ;;  %v3777_v3 = vld [vmem:[#allocation2 + $0x200] ss:$16 sps:$4 sm:$0xff]   ;;  %vm1378_vm0 = vcmask 130048  }
  0x5d   :  { %1464 = vmatprep.subr.bf16.mxu0 %v3774_v1  ;;  %v3778_v4 = vld [vmem:[#allocation2 + $0x24] ss:$16 sps:$4 sm:$0xff]   ;;  %1392 = vmatpush1.bf16.msra.mxu1 %v3776_v2  ;;  %v3782_v6 = vld [vmem:[#allocation2 + $0x20] ss:$16 sps:$4 sm:$0xff]  }
  0x5e   :  { %1465 = vmatpush1.bf16.msra.mxu0 %v3777_v3  ;;  %v3780_v5 = vld [vmem:[#allocation2 + $0x224] ss:$16 sps:$4 sm:$0xff]   ;;  %1393 = vmatprep.subr.bf16.mxu1 %v3778_v4  ;;  %v3783_v7 = vld [vmem:[#allocation2 + $0x220] ss:$16 sps:$4 sm:$0xff]  }
  0x5f   :  { %1466 = vmatprep.subr.bf16.mxu0 %v3780_v5  ;;  %v3784_v8 = vld [vmem:[#allocation2 + $0x44] ss:$16 sps:$4 sm:$0xff]   ;;  %v3788_v10 = vld [vmem:[#allocation2 + $0x40] ss:$16 sps:$4 sm:$0xff]  }
  0x60   :  { %v3786_v9 = vld [vmem:[#allocation2 + $0x244] ss:$16 sps:$4 sm:$0xff]   ;;  %v3789_v11 = vld [vmem:[#allocation2 + $0x240] ss:$16 sps:$4 sm:$0xff]  }
  0x61   :  { %1394 = vmatpush1.bf16.msra.mxu1 %v3782_v6  ;;  %v3790_v12 = vld [vmem:[#allocation2 + $0x64] ss:$16 sps:$4 sm:$0xff]   ;;  %v3794_v14 = vld [vmem:[#allocation2 + $0x60] ss:$16 sps:$4 sm:$0xff]  }
  0x62   :  { %1467 = vmatpush1.bf16.msra.mxu0 %v3783_v7  ;;  %1395 = vmatprep.subr.bf16.mxu1 %v3784_v8  ;;  %v3792_v13 = vld [vmem:[#allocation2 + $0x264] ss:$16 sps:$4 sm:$0xff]   ;;  %v3795_v15 = vld [vmem:[#allocation2 + $0x260] ss:$16 sps:$4 sm:$0xff]  }
  0x63   :  { %1468 = vmatprep.subr.bf16.mxu0 %v3786_v9  ;;  %v3796_v16 = vld [vmem:[#allocation2 + $0x84] ss:$16 sps:$4 sm:$0xff]   ;;  %v3800_v18 = vld [vmem:[#allocation2 + $0x80] ss:$16 sps:$4 sm:$0xff]  }
  0x64   :  { %v3798_v17 = vld [vmem:[#allocation2 + $0x284] ss:$16 sps:$4 sm:$0xff]   ;;  %v3801_v19 = vld [vmem:[#allocation2 + $0x280] ss:$16 sps:$4 sm:$0xff]  }
  0x65   :  { %1396 = vmatpush1.bf16.msra.mxu1 %v3788_v10  ;;  %v3802_v20 = vld [vmem:[#allocation2 + $0xa4] ss:$16 sps:$4 sm:$0xff]   ;;  %v3806_v22 = vld [vmem:[#allocation2 + $0xa0] ss:$16 sps:$4 sm:$0xff]  }
  0x66   :  { %1469 = vmatpush1.bf16.msra.mxu0 %v3789_v11  ;;  %1397 = vmatprep.subr.bf16.mxu1 %v3790_v12  ;;  %v3804_v21 = vld [vmem:[#allocation2 + $0x2a4] ss:$16 sps:$4 sm:$0xff]   ;;  %v3807_v23 = vld [vmem:[#allocation2 + $0x2a0] ss:$16 sps:$4 sm:$0xff]   ;;  %v3873_v11 = vld [vmem:[#allocation2 + $0xc] ss:$16 sps:$4 sm:$0xff]  }
  0x67   :  { %1470 = vmatprep.subr.bf16.mxu0 %v3792_v13  ;;  %v3808_v24 = vld [vmem:[#allocation2 + $0xc4] ss:$16 sps:$4 sm:$0xff]   ;;  %v3812_v26 = vld [vmem:[#allocation2 + $0xc0] ss:$16 sps:$4 sm:$0xff]  }
  0x68   :  { %v3810_v25 = vld [vmem:[#allocation2 + $0x2c4] ss:$16 sps:$4 sm:$0xff]   ;;  %v3813_v27 = vld [vmem:[#allocation2 + $0x2c0] ss:$16 sps:$4 sm:$0xff]  }
  0x69   :  { %1398 = vmatpush1.bf16.msra.mxu1 %v3794_v14  ;;  %v3814_v28 = vld [vmem:[#allocation2 + $0xe4] ss:$16 sps:$4 sm:$0xff]   ;;  %v3818_v30 = vld [vmem:[#allocation2 + $0xe0] ss:$16 sps:$4 sm:$0xff]   ;;  %v3871_v14 = vld [vmem:[#allocation2 + $0x8] ss:$16 sps:$4 sm:$0xff]  }
  0x6a   :  { %1471 = vmatpush1.bf16.msra.mxu0 %v3795_v15  ;;  %1399 = vmatprep.subr.bf16.mxu1 %v3796_v16  ;;  %v3816_v29 = vld [vmem:[#allocation2 + $0x2e4] ss:$16 sps:$4 sm:$0xff]   ;;  %v3819_v31 = vld [vmem:[#allocation2 + $0x2e0] ss:$16 sps:$4 sm:$0xff]  }
  0x6b   :  { %1472 = vmatprep.subr.bf16.mxu0 %v3798_v17  ;;  %v3820_v32 = vld [vmem:[#allocation2 + $0x104] ss:$16 sps:$4 sm:$0xff]   ;;  %v3824_v34 = vld [vmem:[#allocation2 + $0x100] ss:$16 sps:$4 sm:$0xff]   ;;  %v3879_v17 = vld [vmem:[#allocation2 + $0x2c] ss:$16 sps:$4 sm:$0xff]  }
  0x6c   :  { %v3822_v33 = vld [vmem:[#allocation2 + $0x304] ss:$16 sps:$4 sm:$0xff]   ;;  %v3825_v35 = vld [vmem:[#allocation2 + $0x300] ss:$16 sps:$4 sm:$0xff]  }
  0x6d   :  { %1400 = vmatpush1.bf16.msra.mxu1 %v3800_v18  ;;  %v3826_v36 = vld [vmem:[#allocation2 + $0x124] ss:$16 sps:$4 sm:$0xff]   ;;  %v3830_v38 = vld [vmem:[#allocation2 + $0x120] ss:$16 sps:$4 sm:$0xff]  }
  0x6e   :  { %1473 = vmatpush1.bf16.msra.mxu0 %v3801_v19  ;;  %1401 = vmatprep.subr.bf16.mxu1 %v3802_v20  ;;  %v3828_v37 = vld [vmem:[#allocation2 + $0x324] ss:$16 sps:$4 sm:$0xff]   ;;  %v3831_v39 = vld [vmem:[#allocation2 + $0x320] ss:$16 sps:$4 sm:$0xff]   ;;  %v3877_v19 = vld [vmem:[#allocation2 + $0x28] ss:$16 sps:$4 sm:$0xff]  }
  0x6f   :  { %1474 = vmatprep.subr.bf16.mxu0 %v3804_v21  ;;  %v3832_v40 = vld [vmem:[#allocation2 + $0x144] ss:$16 sps:$4 sm:$0xff]   ;;  %v3836_v42 = vld [vmem:[#allocation2 + $0x140] ss:$16 sps:$4 sm:$0xff]   ;;  %v3885_v21 = vld [vmem:[#allocation2 + $0x4c] ss:$16 sps:$4 sm:$0xff]  }
  0x70   :  { %v3834_v41 = vld [vmem:[#allocation2 + $0x344] ss:$16 sps:$4 sm:$0xff]   ;;  %v3837_v43 = vld [vmem:[#allocation2 + $0x340] ss:$16 sps:$4 sm:$0xff]  }
  0x71   :  { %1402 = vmatpush1.bf16.msra.mxu1 %v3806_v22  ;;  %v3838_v44 = vld [vmem:[#allocation2 + $0x164] ss:$16 sps:$4 sm:$0xff]   ;;  %v97_v46 = vld [vmem:[#allocation9 + $0x8] sm:$0xff]  ;;  %v99_v51 = vld [vmem:[#allocation9 + $0x18] sm:$0xff] }
  0x72   :  { %1475 = vmatpush1.bf16.msra.mxu0 %v3807_v23  ;;  %1403 = vmatprep.subr.bf16.mxu1 %v3808_v24  ;;  %v3840_v45 = vld [vmem:[#allocation2 + $0x364] ss:$16 sps:$4 sm:$0xff]   ;;  %v3842_v47 = vld [vmem:[#allocation2 + $0x160] ss:$16 sps:$4 sm:$0xff]   ;;  %v3883_v23 = vld [vmem:[#allocation2 + $0x48] ss:$16 sps:$4 sm:$0xff]  }
  0x73   :  { %1476 = vmatprep.subr.bf16.mxu0 %v3810_v25  ;;  %v3843_v48 = vld [vmem:[#allocation2 + $0x360] ss:$16 sps:$4 sm:$0xff]   ;;  %v104_v49 = vld [vmem:[#allocation9 + $0x40] sm:$0xff]  ;;  %v106_v52 = vld [vmem:[#allocation9 + $0x50] sm:$0xff] }
  0x74   :  { %v4484_v50 = vpack.c.bf16 %v104_v49, %v97_v46  ;;  %v3844_v53 = vld [vmem:[#allocation2 + $0x184] ss:$16 sps:$4 sm:$0xff]   ;;  %v4486_v55 = vpack.c.bf16 %v106_v52, %v99_v51  ;;  %v3848_v56 = vld [vmem:[#allocation2 + $0x180] ss:$16 sps:$4 sm:$0xff]   ;;  %v3891_v25 = vld [vmem:[#allocation2 + $0x6c] ss:$16 sps:$4 sm:$0xff]  }
  0x75   :  { %1404 = vmatpush1.bf16.msra.mxu1 %v3812_v26  ;;  %v3846_v54 = vld [vmem:[#allocation2 + $0x384] ss:$16 sps:$4 sm:$0xff]   ;;  %v3849_v57 = vld [vmem:[#allocation2 + $0x380] ss:$16 sps:$4 sm:$0xff]  }
  0x76   :  { %1477 = vmatpush1.bf16.msra.mxu0 %v3813_v27  ;;  %1405 = vmatprep.subr.bf16.mxu1 %v3814_v28  ;;  %v3850_v58 = vld [vmem:[#allocation2 + $0x1a4] ss:$16 sps:$4 sm:$0xff]   ;;  %v3854_v60 = vld [vmem:[#allocation2 + $0x1a0] ss:$16 sps:$4 sm:$0xff]  }
  0x77   :  { %1478 = vmatprep.subr.bf16.mxu0 %v3816_v29  ;;  %1423 = vmatprep.mubr.bf16.mxu1 %v4484_v50  ;;  %v3852_v59 = vld [vmem:[#allocation2 + $0x3a4] ss:$16 sps:$4 sm:$0xff]   ;;  %v3855_v61 = vld [vmem:[#allocation2 + $0x3a0] ss:$16 sps:$4 sm:$0xff]  }
  0x78   :  { %1496 = vmatprep.mubr.bf16.mxu0 %v4486_v55  ;;  %v3856_v62 = vld [vmem:[#allocation2 + $0x1c4] ss:$16 sps:$4 sm:$0xff]   ;;  %v3860_v0 = vld [vmem:[#allocation2 + $0x1c0] ss:$16 sps:$4 sm:$0xff]  }
  0x79   :  { %1406 = vmatpush1.bf16.msra.mxu1 %v3818_v30  ;;  %v3858_v63 = vld [vmem:[#allocation2 + $0x3c4] ss:$16 sps:$4 sm:$0xff]   ;;  %v3861_v1 = vld [vmem:[#allocation2 + $0x3c0] ss:$16 sps:$4 sm:$0xff]  }
  0x7a   :  { %1479 = vmatpush1.bf16.msra.mxu0 %v3819_v31  ;;  %1407 = vmatprep.subr.bf16.mxu1 %v3820_v32  ;;  %v3862_v2 = vld [vmem:[#allocation2 + $0x1e4] ss:$16 sps:$4 sm:$0xff]   ;;  %v3866_v4 = vld [vmem:[#allocation2 + $0x1e0] ss:$16 sps:$4 sm:$0xff]  }
  0x7b   :  { %1480 = vmatprep.subr.bf16.mxu0 %v3822_v33  ;;  %v3864_v3 = vld [vmem:[#allocation2 + $0x3e4] ss:$16 sps:$4 sm:$0xff]   ;;  %v3867_v5 = vld [vmem:[#allocation2 + $0x3e0] ss:$16 sps:$4 sm:$0xff]  }
  0x7c   :  { %v96_v6 = vld [vmem:[#allocation9] sm:$0xff]  ;;  %v103_v7 = vld [vmem:[#allocation9 + $0x38] sm:$0xff]  ;;  %v98_v9 = vld [vmem:[#allocation9 + $0x10] sm:$0xff] }
  0x7d   :  { %1408 = vmatpush1.bf16.msra.mxu1 %v3824_v34  ;;  %v3870_v8 = vld [vmem:[#allocation2 + $0x404] ss:$16 sps:$4 sm:$0xff]   ;;  %v105_v10 = vld [vmem:[#allocation9 + $0x48] sm:$0xff]  ;;  %v4490_v12 = vpack.c.bf16 %v103_v7, %v96_v6  ;;  %v111_v26 = vld [vmem:[#allocation9 + $0x78] sm:$0xff] }
  0x7e   :  { %1481 = vmatpush1.bf16.msra.mxu0 %v3825_v35  ;;  %1409 = vmatprep.subr.bf16.mxu1 %v3826_v36  ;;  %v3868_v13 = vld [vmem:[#allocation2 + $0x400] ss:$16 sps:$4 sm:$0xff]   ;;  %v4492_v15 = vpack.c.bf16 %v105_v10, %v98_v9  ;;  %v3876_v16 = vld [vmem:[#allocation2 + $0x424] ss:$16 sps:$4 sm:$0xff]  }
  0x7f   :  { %1482 = vmatprep.subr.bf16.mxu0 %v3828_v37  ;;  %v3874_v18 = vld [vmem:[#allocation2 + $0x420] ss:$16 sps:$4 sm:$0xff]   ;;  %v3882_v20 = vld [vmem:[#allocation2 + $0x444] ss:$16 sps:$4 sm:$0xff]  }
  0x80   :  { %v3880_v22 = vld [vmem:[#allocation2 + $0x440] ss:$16 sps:$4 sm:$0xff]   ;;  %v3888_v24 = vld [vmem:[#allocation2 + $0x464] ss:$16 sps:$4 sm:$0xff]  }
  0x81   :  { %1410 = vmatpush1.bf16.msra.mxu1 %v3830_v38  ;;  %v118_v27 = vld [vmem:[#allocation9 + $0xb0] sm:$0xff]  ;;  %v117_v30 = vld [vmem:[#allocation9 + $0xa8] sm:$0xff]  ;;  %v120_v32 = vld [vmem:[#allocation9 + $0xc0] sm:$0xff] }
  0x82   :  { %1483 = vmatpush1.bf16.msra.mxu0 %v3831_v39  ;;  %1411 = vmatprep.subr.bf16.mxu1 %v3832_v40  ;;  %v110_v28 = vld [vmem:[#allocation9 + $0x70] sm:$0xff]  ;;  %v4496_v29 = vpack.c.bf16 %v118_v27, %v111_v26  ;;  %v113_v31 = vld [vmem:[#allocation9 + $0x88] sm:$0xff]  ;;  %v112_v35 = vld [vmem:[#allocation9 + $0x80] sm:$0xff] }
  0x83   :  { %1484 = vmatprep.subr.bf16.mxu0 %v3834_v41  ;;  %v4498_v33 = vpack.c.bf16 %v117_v30, %v110_v28  ;;  %v4500_v34 = vpack.c.bf16 %v120_v32, %v113_v31  ;;  %v119_v36 = vld [vmem:[#allocation9 + $0xb8] sm:$0xff]  ;;  %v3889_v38 = vld [vmem:[#allocation2 + $0x68] ss:$16 sps:$4 sm:$0xff]   ;;  %v3894_v40 = vld [vmem:[#allocation2 + $0x484] ss:$16 sps:$4 sm:$0xff]  }
  0x84   :  { %v3886_v37 = vld [vmem:[#allocation2 + $0x460] ss:$16 sps:$4 sm:$0xff]   ;;  %v4503_v39 = vpack.c.bf16 %v119_v36, %v112_v35  ;;  %v3897_v41 = vld [vmem:[#allocation2 + $0x8c] ss:$16 sps:$4 sm:$0xff]   ;;  %v138_v6 = vld [vmem:[#allocation9 + $0x150] sm:$0xff] }
  0x85   :  { %1412 = vmatpush1.bf16.msra.mxu1 %v3836_v42  ;;  %v3892_v42 = vld [vmem:[#allocation2 + $0x480] ss:$16 sps:$4 sm:$0xff]   ;;  %v148_v10 = vld [vmem:[#allocation9 + $0x1a0] sm:$0xff]  ;;  %v3927_v27 = vld [vmem:[#allocation2 + $0x12c] ss:$16 sps:$4 sm:$0xff]  }
  0x86   :  { %1485 = vmatpush1.bf16.msra.mxu0 %v3837_v43  ;;  %1413 = vmatprep.subr.bf16.mxu1 %v3838_v44  ;;  %v3895_v43 = vld [vmem:[#allocation2 + $0x88] ss:$16 sps:$4 sm:$0xff]   ;;  %v3900_v44 = vld [vmem:[#allocation2 + $0x4a4] ss:$16 sps:$4 sm:$0xff]   ;;  %v125_v46 = vld [vmem:[#allocation9 + $0xe8] sm:$0xff] }
  0x87   :  { %1486 = vmatprep.subr.bf16.mxu0 %v3840_v45  ;;  %v3903_v45 = vld [vmem:[#allocation2 + $0xac] ss:$16 sps:$4 sm:$0xff]   ;;  %v108_v26 = vld [vmem:[#allocation9 + $0x60] sm:$0xff]  ;;  %v3922_v30 = vld [vmem:[#allocation2 + $0x520] ss:$16 sps:$4 sm:$0xff]  }
  0x88   :  { %v131_v51 = vld [vmem:[#allocation9 + $0x118] sm:$0xff]  ;;  %v141_v9 = vld [vmem:[#allocation9 + $0x168] sm:$0xff]  ;;  %v3925_v31 = vld [vmem:[#allocation2 + $0x128] ss:$16 sps:$4 sm:$0xff]  }
  0x89   :  { %1414 = vmatpush1.bf16.msra.mxu1 %v3842_v47  ;;  %v132_v47 = vld [vmem:[#allocation9 + $0x120] sm:$0xff]  ;;  %v127_v52 = vld [vmem:[#allocation9 + $0xf8] sm:$0xff] }
  0x8a   :  { %1487 = vmatpush1.bf16.msra.mxu0 %v3843_v48  ;;  %1415 = vmatprep.subr.bf16.mxu1 %v3844_v53  ;;  %v124_v48 = vld [vmem:[#allocation9 + $0xe0] sm:$0xff]  ;;  %v4508_v49 = vpack.c.bf16 %v132_v47, %v125_v46  ;;  %v134_v53 = vld [vmem:[#allocation9 + $0x130] sm:$0xff]  ;;  %v3928_v35 = vld [vmem:[#allocation2 + $0x540] ss:$16 sps:$4 sm:$0xff]  }
  0x8b   :  { %1488 = vmatprep.subr.bf16.mxu0 %v3846_v54  ;;  %v4510_v54 = vpack.c.bf16 %v131_v51, %v124_v48  ;;  %v3930_v32 = vld [vmem:[#allocation2 + $0x544] ss:$16 sps:$4 sm:$0xff]   ;;  %v3931_v36 = vld [vmem:[#allocation2 + $0x148] ss:$16 sps:$4 sm:$0xff]   ;;  %v3951_v47 = vld [vmem:[#allocation2 + $0x1ac] ss:$16 sps:$4 sm:$0xff]  }
  0x8c   :  { %v3948_v46 = vld [vmem:[#allocation2 + $0x5a4] ss:$16 sps:$4 sm:$0xff]   ;;  %v3946_v48 = vld [vmem:[#allocation2 + $0x5a0] ss:$16 sps:$4 sm:$0xff]   ;;  %v3949_v51 = vld [vmem:[#allocation2 + $0x1a8] ss:$16 sps:$4 sm:$0xff]  }
  0x8d   :  { %1416 = vmatpush1.bf16.msra.mxu1 %v3848_v56  ;;  %v4512_v56 = vpack.c.bf16 %v134_v53, %v127_v52  ;;  %v3954_v52 = vld [vmem:[#allocation2 + $0x5c4] ss:$16 sps:$4 sm:$0xff]   ;;  %v3957_v53 = vld [vmem:[#allocation2 + $0x1cc] ss:$16 sps:$4 sm:$0xff]  }
  0x8e   :  { %1489 = vmatpush1.bf16.msra.mxu0 %v3849_v57  ;;  %1417 = vmatprep.subr.bf16.mxu1 %v3850_v58  ;;  %v126_v57 = vld [vmem:[#allocation9 + $0xf0] sm:$0xff]  ;;  %v133_v58 = vld [vmem:[#allocation9 + $0x128] sm:$0xff] }
  0x8f   :  { %1490 = vmatprep.subr.bf16.mxu0 %v3852_v59  ;;  %v3898_v59 = vld [vmem:[#allocation2 + $0x4a0] ss:$16 sps:$4 sm:$0xff]  }
  0x91   :  { %1418 = vmatpush1.bf16.msra.mxu1 %v3854_v60  ;;  %v3901_v60 = vld [vmem:[#allocation2 + $0xa8] ss:$16 sps:$4 sm:$0xff]  }
  0x92   :  { %1491 = vmatpush1.bf16.msra.mxu0 %v3855_v61  ;;  %1419 = vmatprep.subr.bf16.mxu1 %v3856_v62  ;;  %v4515_v61 = vpack.c.bf16 %v133_v58, %v126_v57  ;;  %v3906_v62 = vld [vmem:[#allocation2 + $0x4c4] ss:$16 sps:$4 sm:$0xff]   ;;  %v3952_v57 = vld [vmem:[#allocation2 + $0x5c0] ss:$16 sps:$4 sm:$0xff]   ;;  %v3955_v58 = vld [vmem:[#allocation2 + $0x1c8] ss:$16 sps:$4 sm:$0xff]  }
  0x93   :  { %1492 = vmatprep.subr.bf16.mxu0 %v3858_v63  ;;  %v3909_v63 = vld [vmem:[#allocation2 + $0xcc] ss:$16 sps:$4 sm:$0xff]  }
  0x95   :  { %1420 = vmatpush1.bf16.msra.mxu1 %v3860_v0  ;;  %v3904_v0 = vld [vmem:[#allocation2 + $0x4c0] ss:$16 sps:$4 sm:$0xff]  }
  0x96   :  { %1493 = vmatpush1.bf16.msra.mxu0 %v3861_v1  ;;  %1421 = vmatprep.subr.bf16.mxu1 %v3862_v2  ;;  %v3907_v1 = vld [vmem:[#allocation2 + $0xc8] ss:$16 sps:$4 sm:$0xff]   ;;  %v3912_v2 = vld [vmem:[#allocation2 + $0x4e4] ss:$16 sps:$4 sm:$0xff]  }
  0x97   :  { %1494 = vmatprep.subr.bf16.mxu0 %v3864_v3  ;;  %v3915_v3 = vld [vmem:[#allocation2 + $0xec] ss:$16 sps:$4 sm:$0xff]  }
  0x99   :  { %1422 = vmatpush1.bf16.msra.mxu1 %v3866_v4  ;;  %v139_v4 = vld [vmem:[#allocation9 + $0x158] sm:$0xff] }
  0x9a   :  { %1495 = vmatpush1.bf16.msra.mxu0 %v3867_v5  ;;  %1683 = vmatprep.subr.bf16.mxu1 %v3873_v11  ;;  %v146_v5 = vld [vmem:[#allocation9 + $0x190] sm:$0xff] }
  0x9b   :  { %1537 = vmatprep.subr.bf16.mxu0 %v3870_v8  ;;  %v4520_v7 = vpack.c.bf16 %v146_v5, %v139_v4  ;;  %v145_v8 = vld [vmem:[#allocation9 + $0x188] sm:$0xff]  ;;  %v122_v4 = vld [vmem:[#allocation9 + $0xd0] sm:$0xff] }
  0x9c   :  { %1424 = vmatmul.mubr.bf16.vlgmr.msra.gmra.mrb[0].mxu1 %v4490_v12  ;;  %v4522_v11 = vpack.c.bf16 %v145_v8, %v138_v6  ;;  %v3987_v5 = vld [vmem:[#allocation2 + $0x604] ss:$16 sps:$4 sm:$0xff]   ;;  %v3964_v8 = vld [vmem:[#allocation2 + $0x208] ss:$16 sps:$4 sm:$0xff]  }
  0x9d   :  { %1497 = vmatmul.mubr.bf16.vlgmr.msra.gmra.mrb[0].mxu0 %v4492_v15  ;;  %1684 = vmatpush1.bf16.msra.mxu1 %v3871_v14  ;;  %v140_v14 = vld [vmem:[#allocation9 + $0x160] sm:$0xff] }
  0x9e   :  { %1538 = vmatpush1.bf16.msra.mxu0 %v3868_v13  ;;  %1685 = vmatprep.subr.bf16.mxu1 %v3879_v17  ;;  %v4524_v13 = vpack.c.bf16 %v148_v10, %v141_v9  ;;  %v3910_v17 = vld [vmem:[#allocation2 + $0x4e0] ss:$16 sps:$4 sm:$0xff]   ;;  %v3969_v9 = vld [vmem:[#allocation2 + $0x22c] ss:$16 sps:$4 sm:$0xff]  }
  0x9f   :  { %1539 = vmatprep.subr.bf16.mxu0 %v3876_v16  ;;  %1433 = vmatprep.mubr.bf16.mxu1 %v4496_v29  ;;  %v147_v16 = vld [vmem:[#allocation9 + $0x198] sm:$0xff] }
  0xa0   :  { %1506 = vmatprep.mubr.bf16.mxu0 %v4500_v34 }
  0xa1   :  { %1686 = vmatpush1.bf16.msra.mxu1 %v3877_v19  ;;  %v4527_v19 = vpack.c.bf16 %v147_v16, %v140_v14  ;;  %v3985_v14 = vld [vmem:[#allocation2 + $0x600] ss:$16 sps:$4 sm:$0xff]   ;;  %v3967_v16 = vld [vmem:[#allocation2 + $0x228] ss:$16 sps:$4 sm:$0xff]  }
  0xa2   :  { %1540 = vmatpush1.bf16.msra.mxu0 %v3874_v18  ;;  %1687 = vmatprep.subr.bf16.mxu1 %v3885_v21  ;;  %v3913_v18 = vld [vmem:[#allocation2 + $0xe8] ss:$16 sps:$4 sm:$0xff]   ;;  %v3921_v21 = vld [vmem:[#allocation2 + $0x10c] ss:$16 sps:$4 sm:$0xff]  }
  0xa3   :  { %1541 = vmatprep.subr.bf16.mxu0 %v3882_v20  ;;  %v3918_v20 = vld [vmem:[#allocation2 + $0x504] ss:$16 sps:$4 sm:$0xff]  }
  0xa4   :  { %1434 = vmatmul.mubr.bf16.gmra.mrb[4].mxu1 %v4498_v33 }
  0xa5   :  { %1688 = vmatpush1.bf16.msra.mxu1 %v3883_v23  ;;  %1507 = vmatmul.mubr.bf16.gmra.mrb[4].mxu0 %v4503_v39  ;;  %v3919_v23 = vld [vmem:[#allocation2 + $0x108] ss:$16 sps:$4 sm:$0xff]  }
  0xa6   :  { %1542 = vmatpush1.bf16.msra.mxu0 %v3880_v22  ;;  %1689 = vmatprep.subr.bf16.mxu1 %v3891_v25  ;;  %v3916_v22 = vld [vmem:[#allocation2 + $0x500] ss:$16 sps:$4 sm:$0xff]  }
  0xa7   :  { %1543 = vmatprep.subr.bf16.mxu0 %v3888_v24  ;;  %1443 = vmatprep.mubr.bf16.mxu1 %v4508_v49  ;;  %v3924_v24 = vld [vmem:[#allocation2 + $0x524] ss:$16 sps:$4 sm:$0xff]   ;;  %v101_v25 = vld [vmem:[#allocation9 + $0x28] sm:$0xff] }
  0xa8   :  { %1516 = vmatprep.mubr.bf16.mxu0 %v4512_v56  ;;  %v4533_v28 = vpack.c.bf16 %v108_v26, %v101_v25  ;;  %v3975_v26 = vld [vmem:[#allocation2 + $0x26c] ss:$16 sps:$4 sm:$0xff]  }
  0xa9   :  { %1690 = vmatpush1.bf16.msra.mxu1 %v3889_v38  ;;  %v3939_v38 = vld [vmem:[#allocation2 + $0x16c] ss:$16 sps:$4 sm:$0xff]  }
  0xaa   :  { %1544 = vmatpush1.bf16.msra.mxu0 %v3886_v37  ;;  %1691 = vmatprep.subr.bf16.mxu1 %v3897_v41  ;;  %v3936_v37 = vld [vmem:[#allocation2 + $0x564] ss:$16 sps:$4 sm:$0xff]   ;;  %v3937_v41 = vld [vmem:[#allocation2 + $0x168] ss:$16 sps:$4 sm:$0xff]  }
  0xab   :  { %1545 = vmatprep.subr.bf16.mxu0 %v3894_v40  ;;  %v3934_v40 = vld [vmem:[#allocation2 + $0x560] ss:$16 sps:$4 sm:$0xff]  }
  0xac   :  { %1444 = vmatmul.mubr.bf16.gmra.mrb[8].mxu1 %v4510_v54 }
  0xad   :  { %1692 = vmatpush1.bf16.msra.mxu1 %v3895_v43  ;;  %1517 = vmatmul.mubr.bf16.gmra.mrb[8].mxu0 %v4515_v61  ;;  %v3945_v43 = vld [vmem:[#allocation2 + $0x18c] ss:$16 sps:$4 sm:$0xff]  }
  0xae   :  { %1546 = vmatpush1.bf16.msra.mxu0 %v3892_v42  ;;  %1693 = vmatprep.subr.bf16.mxu1 %v3903_v45  ;;  %v3942_v42 = vld [vmem:[#allocation2 + $0x584] ss:$16 sps:$4 sm:$0xff]   ;;  %v3943_v45 = vld [vmem:[#allocation2 + $0x188] ss:$16 sps:$4 sm:$0xff]  }
  0xaf   :  { %1547 = vmatprep.subr.bf16.mxu0 %v3900_v44  ;;  %1453 = vmatprep.mubr.bf16.mxu1 %v4520_v7  ;;  %v3940_v44 = vld [vmem:[#allocation2 + $0x580] ss:$16 sps:$4 sm:$0xff]  }
  0xb0   :  { %1526 = vmatprep.mubr.bf16.mxu0 %v4524_v13 }
  0xb1   :  { %1694 = vmatpush1.bf16.msra.mxu1 %v3901_v60  ;;  %v3963_v60 = vld [vmem:[#allocation2 + $0x1ec] ss:$16 sps:$4 sm:$0xff]  }
  0xb2   :  { %1548 = vmatpush1.bf16.msra.mxu0 %v3898_v59  ;;  %1695 = vmatprep.subr.bf16.mxu1 %v3909_v63  ;;  %v3960_v59 = vld [vmem:[#allocation2 + $0x5e4] ss:$16 sps:$4 sm:$0xff]   ;;  %v3961_v63 = vld [vmem:[#allocation2 + $0x1e8] ss:$16 sps:$4 sm:$0xff]  }
  0xb3   :  { %1549 = vmatprep.subr.bf16.mxu0 %v3906_v62  ;;  %v3958_v62 = vld [vmem:[#allocation2 + $0x5e0] ss:$16 sps:$4 sm:$0xff]  }
  0xb4   :  { %1454 = vmatmul.mubr.bf16.gmra.mrb[12].mxu1 %v4522_v11 }
  0xb5   :  { %1696 = vmatpush1.bf16.msra.mxu1 %v3907_v1  ;;  %1527 = vmatmul.mubr.bf16.gmra.mrb[12].mxu0 %v4527_v19  ;;  %v107_v1 = vld [vmem:[#allocation9 + $0x58] sm:$0xff] }
  0xb6   :  { %1550 = vmatpush1.bf16.msra.mxu0 %v3904_v0  ;;  %1697 = vmatprep.subr.bf16.mxu1 %v3915_v3  ;;  %v100_v0 = vld [vmem:[#allocation9 + $0x20] sm:$0xff]  ;;  %v115_v3 = vld [vmem:[#allocation9 + $0x98] sm:$0xff] }
  0xb7   :  { %1551 = vmatprep.subr.bf16.mxu0 %v3912_v2  ;;  %1715 = vmatprep.mubr.bf16.mxu1 %v4484_v50  ;;  %v3933_v50 = vld [vmem:[#allocation2 + $0x14c] ss:$16 sps:$4 sm:$0xff]   ;;  %v4536_v6 = vpack.c.bf16 %v107_v1, %v100_v0  ;;  %v4538_v10 = vpack.c.bf16 %v122_v4, %v115_v3  ;;  %v4003_v1 = vld [vmem:[#allocation2 + $0x388] ss:$16 sps:$4 sm:$0xff]  }
  0xb8   :  { %1569 = vmatprep.mubr.bf16.mxu0 %v4533_v28  ;;  %v3966_v2 = vld [vmem:[#allocation2 + $0x20c] ss:$16 sps:$4 sm:$0xff]   ;;  %v4006_v4 = vld [vmem:[#allocation2 + $0x3a8] ss:$16 sps:$4 sm:$0xff]  }
  0xb9   :  { %1698 = vmatpush1.bf16.msra.mxu1 %v3913_v18  ;;  %v121_v18 = vld [vmem:[#allocation9 + $0xc8] sm:$0xff] }
  0xba   :  { %1552 = vmatpush1.bf16.msra.mxu0 %v3910_v17  ;;  %1699 = vmatprep.subr.bf16.mxu1 %v3921_v21  ;;  %v114_v17 = vld [vmem:[#allocation9 + $0x90] sm:$0xff]  ;;  %v129_v21 = vld [vmem:[#allocation9 + $0x108] sm:$0xff] }
  0xbb   :  { %1553 = vmatprep.subr.bf16.mxu0 %v3918_v20  ;;  %v3972_v20 = vld [vmem:[#allocation2 + $0x24c] ss:$16 sps:$4 sm:$0xff]  }
  0xbc   :  { %v4005_v0 = vld [vmem:[#allocation2 + $0x38c] ss:$16 sps:$4 sm:$0xff]  }
  0xbd   :  { %1700 = vmatpush1.bf16.msra.mxu1 %v3919_v23  ;;  %v4544_v23 = vpack.c.bf16 %v121_v18, %v114_v17  ;;  %v4008_v3 = vld [vmem:[#allocation2 + $0x3ac] ss:$16 sps:$4 sm:$0xff]  }
  0xbe   :  { %1554 = vmatpush1.bf16.msra.mxu0 %v3916_v22  ;;  %1701 = vmatprep.subr.bf16.mxu1 %v3927_v27  ;;  %v136_v22 = vld [vmem:[#allocation9 + $0x140] sm:$0xff]  ;;  %v4014_v17 = vld [vmem:[#allocation2 + $0x3ec] ss:$16 sps:$4 sm:$0xff]  }
  0xbf   :  { %1555 = vmatprep.subr.bf16.mxu0 %v3924_v24  ;;  %v3970_v24 = vld [vmem:[#allocation2 + $0x248] ss:$16 sps:$4 sm:$0xff]   ;;  %v4546_v25 = vpack.c.bf16 %v136_v22, %v129_v21  ;;  %v4066_v18 = vld [vmem:[#allocation6] ss:$8 sps:$4 sm:$0xff]  }
  0xc0   :  { %v128_v27 = vld [vmem:[#allocation9 + $0x100] sm:$0xff]  ;;  %v4071_v22 = vld [vmem:[#allocation6 + $0x14] ss:$8 sps:$4 sm:$0xff]  }
  0xc1   :  { %1702 = vmatpush1.bf16.msra.mxu1 %v3925_v31  ;;  %v3978_v31 = vld [vmem:[#allocation2 + $0x28c] ss:$16 sps:$4 sm:$0xff]   ;;  %v4012_v21 = vld [vmem:[#allocation2 + $0x3e8] ss:$16 sps:$4 sm:$0xff]  }
  0xc2   :  { %1556 = vmatpush1.bf16.msra.mxu0 %v3922_v30  ;;  %1703 = vmatprep.subr.bf16.mxu1 %v3933_v50  ;;  %v135_v30 = vld [vmem:[#allocation9 + $0x138] sm:$0xff] }
  0xc3   :  { %1557 = vmatprep.subr.bf16.mxu0 %v3930_v32  ;;  %v150_v32 = vld [vmem:[#allocation9 + $0x1b0] sm:$0xff]  ;;  %v4552_v50 = vpack.c.bf16 %v135_v30, %v128_v27  ;;  %v4020_v30 = vld [vmem:[#allocation2 + $0x42c] ss:$16 sps:$4 sm:$0xff]  }
  0xc4   :  { %v4015_v27 = vld [vmem:[#allocation2 + $0x408] ss:$16 sps:$4 sm:$0xff]  }
  0xc5   :  { %1704 = vmatpush1.bf16.msra.mxu1 %v3931_v36 }
  0xc6   :  { %1558 = vmatpush1.bf16.msra.mxu0 %v3928_v35  ;;  %1705 = vmatprep.subr.bf16.mxu1 %v3939_v38  ;;  %v3976_v35 = vld [vmem:[#allocation2 + $0x288] ss:$16 sps:$4 sm:$0xff]  }
  0xc7   :  { %1559 = vmatprep.subr.bf16.mxu0 %v3936_v37  ;;  %v3981_v37 = vld [vmem:[#allocation2 + $0x2ac] ss:$16 sps:$4 sm:$0xff]   ;;  %v3979_v38 = vld [vmem:[#allocation2 + $0x2a8] ss:$16 sps:$4 sm:$0xff]  }
  0xc9   :  { %1706 = vmatpush1.bf16.msra.mxu1 %v3937_v41  ;;  %v3982_v41 = vld [vmem:[#allocation2 + $0x2c8] ss:$16 sps:$4 sm:$0xff]  }
  0xca   :  { %1560 = vmatpush1.bf16.msra.mxu0 %v3934_v40  ;;  %1707 = vmatprep.subr.bf16.mxu1 %v3945_v43  ;;  %v149_v40 = vld [vmem:[#allocation9 + $0x1a8] sm:$0xff] }
  0xcb   :  { %1561 = vmatprep.subr.bf16.mxu0 %v3942_v42  ;;  %v3990_v43 = vld [vmem:[#allocation2 + $0x2ec] ss:$16 sps:$4 sm:$0xff]  }
  0xcd   :  { %1708 = vmatpush1.bf16.msra.mxu1 %v3943_v45  ;;  %v102_v45 = vld [vmem:[#allocation9 + $0x30] sm:$0xff] }
  0xce   :  { %1562 = vmatpush1.bf16.msra.mxu0 %v3940_v44  ;;  %1709 = vmatprep.subr.bf16.mxu1 %v3951_v47  ;;  %v3988_v44 = vld [vmem:[#allocation2 + $0x2e8] ss:$16 sps:$4 sm:$0xff]   ;;  %v4371_v47 = vmov 0  }
  0xcf   :  { %1563 = vmatprep.subr.bf16.mxu0 %v3948_v46  ;;  %v109_v46 = vld [vmem:[#allocation9 + $0x68] sm:$0xff] }
  0xd1   :  { %1710 = vmatpush1.bf16.msra.mxu1 %v3949_v51  ;;  %v3996_v51 = vld [vmem:[#allocation2 + $0x32c] ss:$16 sps:$4 sm:$0xff]  }
  0xd2   :  { %1564 = vmatpush1.bf16.msra.mxu0 %v3946_v48  ;;  %1711 = vmatprep.subr.bf16.mxu1 %v3957_v53  ;;  %v4566_v48 = vpack.c.bf16 %v109_v46, %v102_v45  ;;  %v116_v53 = vld [vmem:[#allocation9 + $0xa0] sm:$0xff]  ;;  %v4032_v46 = vld [vmem:[#allocation2 + $0x4ac] ss:$16 sps:$4 sm:$0xff]  }
  0xd3   :  { %1565 = vmatprep.subr.bf16.mxu0 %v3954_v52  ;;  %v3994_v52 = vld [vmem:[#allocation2 + $0x328] ss:$16 sps:$4 sm:$0xff]  }
  0xd4   :  { %v4027_v45 = vld [vmem:[#allocation2 + $0x488] ss:$16 sps:$4 sm:$0xff]  }
  0xd5   :  { %1712 = vmatpush1.bf16.msra.mxu1 %v3955_v58  ;;  %v3997_v58 = vld [vmem:[#allocation2 + $0x348] ss:$16 sps:$4 sm:$0xff]  }
  0xd6   :  { %1566 = vmatpush1.bf16.msra.mxu0 %v3952_v57  ;;  %1713 = vmatprep.subr.bf16.mxu1 %v3963_v60  ;;  %v123_v57 = vld [vmem:[#allocation9 + $0xd8] sm:$0xff]  ;;  %v4000_v60 = vld [vmem:[#allocation2 + $0x368] ss:$16 sps:$4 sm:$0xff]  }
  0xd7   :  { %1567 = vmatprep.subr.bf16.mxu0 %v3960_v59  ;;  %v4002_v59 = vld [vmem:[#allocation2 + $0x36c] ss:$16 sps:$4 sm:$0xff]  }
  0xd9   :  { %1714 = vmatpush1.bf16.msra.mxu1 %v3961_v63  ;;  %v137_v63 = vld [vmem:[#allocation9 + $0x148] sm:$0xff] }
  0xda   :  { %1568 = vmatpush1.bf16.msra.mxu0 %v3958_v62  ;;  %1756 = vmatprep.subr.bf16.mxu1 %v3966_v2  ;;  %v130_v62 = vld [vmem:[#allocation9 + $0x110] sm:$0xff] }
  0xdb   :  { %1610 = vmatprep.subr.bf16.mxu0 %v3987_v5  ;;  %v4576_v2 = vpack.c.bf16 %v137_v63, %v130_v62  ;;  %v144_v5 = vld [vmem:[#allocation9 + $0x180] sm:$0xff]  ;;  %v4044_v63 = vld [vmem:[#allocation2 + $0x52c] ss:$16 sps:$4 sm:$0xff]  }
  0xdc   :  { %1716 = vmatmul.mubr.bf16.vlgmr.msra.gmra.mrb[16].mxu1 %v4490_v12  ;;  %v3973_v12 = vld [vmem:[#allocation2 + $0x268] ss:$16 sps:$4 sm:$0xff]  }
  0xdd   :  { %1570 = vmatmul.mubr.bf16.vlgmr.msra.gmra.mrb[0].mxu0 %v4536_v6  ;;  %1757 = vmatpush1.bf16.msra.mxu1 %v3964_v8  ;;  %v151_v8 = vld [vmem:[#allocation9 + $0x1b8] sm:$0xff]  ;;  %v4039_v62 = vld [vmem:[#allocation2 + $0x508] ss:$16 sps:$4 sm:$0xff]  }
  0xde   :  { %1579 = vmatprep.mubr.bf16.mxu0 %v4538_v10  ;;  %1758 = vmatprep.subr.bf16.mxu1 %v3969_v9  ;;  %v4011_v9 = vld [vmem:[#allocation2 + $0x3cc] ss:$16 sps:$4 sm:$0xff]  }
  0xdf   :  { %1611 = vmatpush1.bf16.msra.mxu0 %v3985_v14  ;;  %1725 = vmatprep.mubr.bf16.mxu1 %v4496_v29  ;;  %v143_v29 = vld [vmem:[#allocation9 + $0x178] sm:$0xff]  ;;  %v4581_v14 = vpack.c.bf16 %v151_v8, %v144_v5  ;;  %v4045_v5 = vld [vmem:[#allocation2 + $0x548] ss:$16 sps:$4 sm:$0xff]  }
  0xe0   :  { %v4554_v36 = vpack.c.bf16 %v150_v32, %v143_v29  ;;  %v4077_v29 = vld [vmem:[#allocation6 + $0x34] ss:$8 sps:$4 sm:$0xff]   ;;  %v4050_v8 = vld [vmem:[#allocation2 + $0x56c] ss:$16 sps:$4 sm:$0xff]  }
  0xe1   :  { %1759 = vmatpush1.bf16.msra.mxu1 %v3967_v16  ;;  %v4009_v16 = vld [vmem:[#allocation2 + $0x3c8] ss:$16 sps:$4 sm:$0xff]  }
  0xe2   :  { %1760 = vmatprep.subr.bf16.mxu1 %v3972_v20  ;;  %v4068_v20 = vld [vmem:[#allocation6 + $0x4] ss:$8 sps:$4 sm:$0xff]  }
  0xe3   :  { %2387 = vmatprep.subr.bf16.mxu0 %v4068_v20  ;;  %v4018_v32 = vld [vmem:[#allocation2 + $0x428] ss:$16 sps:$4 sm:$0xff]   ;;  %v4105_v20 = vld [vmem:[#allocation6 + $0xd0] ss:$8 sps:$4 sm:$0xff]  }
  0xe4   :  { %1726 = vmatmul.mubr.bf16.gmra.mrb[20].mxu1 %v4498_v33  ;;  %v142_v33 = vld [vmem:[#allocation9 + $0x170] sm:$0xff] }
  0xe5   :  { %1580 = vmatmul.mubr.bf16.gmra.mrb[4].mxu0 %v4544_v23  ;;  %1761 = vmatpush1.bf16.msra.mxu1 %v3970_v24  ;;  %v4560_v42 = vpack.c.bf16 %v149_v40, %v142_v33  ;;  %v4017_v24 = vld [vmem:[#allocation2 + $0x40c] ss:$16 sps:$4 sm:$0xff]   ;;  %v4021_v33 = vld [vmem:[#allocation2 + $0x448] ss:$16 sps:$4 sm:$0xff]  }
  0xe6   :  { %1589 = vmatprep.mubr.bf16.mxu0 %v4546_v25  ;;  %1762 = vmatprep.subr.bf16.mxu1 %v3975_v26  ;;  %v4069_v26 = vld [vmem:[#allocation6 + $0x10] ss:$8 sps:$4 sm:$0xff]  }
  0xe7   :  { %1735 = vmatprep.mubr.bf16.mxu1 %v4508_v49  ;;  %v3984_v49 = vld [vmem:[#allocation2 + $0x2cc] ss:$16 sps:$4 sm:$0xff]  }
  0xe8   :  { %v4026_v40 = vld [vmem:[#allocation2 + $0x46c] ss:$16 sps:$4 sm:$0xff]  }
  0xe9   :  { %1763 = vmatpush1.bf16.msra.mxu1 %v3973_v12  ;;  %v4074_v12 = vld [vmem:[#allocation6 + $0x24] ss:$8 sps:$4 sm:$0xff]  }
  0xea   :  { %1764 = vmatprep.subr.bf16.mxu1 %v3978_v31  ;;  %v4072_v31 = vld [vmem:[#allocation6 + $0x20] ss:$8 sps:$4 sm:$0xff]  }
  0xec   :  { %1736 = vmatmul.mubr.bf16.gmra.mrb[24].mxu1 %v4510_v54  ;;  %v3993_v54 = vld [vmem:[#allocation2 + $0x30c] ss:$16 sps:$4 sm:$0xff]  }
  0xed   :  { %1590 = vmatmul.mubr.bf16.gmra.mrb[8].mxu0 %v4552_v50  ;;  %1765 = vmatpush1.bf16.msra.mxu1 %v3976_v35  ;;  %v4023_v35 = vld [vmem:[#allocation2 + $0x44c] ss:$16 sps:$4 sm:$0xff]  }
  0xee   :  { %1599 = vmatprep.mubr.bf16.mxu0 %v4554_v36  ;;  %1766 = vmatprep.subr.bf16.mxu1 %v3981_v37  ;;  %v4075_v37 = vld [vmem:[#allocation6 + $0x30] ss:$8 sps:$4 sm:$0xff]  }
  0xef   :  { %1745 = vmatprep.mubr.bf16.mxu1 %v4520_v7  ;;  %v3991_v7 = vld [vmem:[#allocation2 + $0x308] ss:$16 sps:$4 sm:$0xff]  }
  0xf1   :  { %1767 = vmatpush1.bf16.msra.mxu1 %v3979_v38  ;;  %v4080_v38 = vld [vmem:[#allocation6 + $0x44] ss:$8 sps:$4 sm:$0xff]  }
  0xf2   :  { %1768 = vmatprep.subr.bf16.mxu1 %v3984_v49  ;;  %v4078_v49 = vld [vmem:[#allocation6 + $0x40] ss:$8 sps:$4 sm:$0xff]  }
  0xf4   :  { %1746 = vmatmul.mubr.bf16.gmra.mrb[28].mxu1 %v4522_v11  ;;  %v3999_v11 = vld [vmem:[#allocation2 + $0x34c] ss:$16 sps:$4 sm:$0xff]  }
  0xf5   :  { %1600 = vmatmul.mubr.bf16.gmra.mrb[12].mxu0 %v4560_v42  ;;  %1769 = vmatpush1.bf16.msra.mxu1 %v3982_v41  ;;  %v4024_v41 = vld [vmem:[#allocation2 + $0x468] ss:$16 sps:$4 sm:$0xff]  }
  0xf6   :  { %1642 = vmatprep.mubr.bf16.mxu0 %v4371_v47  ;;  %1770 = vmatprep.subr.bf16.mxu1 %v3990_v43  ;;  %v4081_v43 = vld [vmem:[#allocation6 + $0x50] ss:$8 sps:$4 sm:$0xff]  }
  0xf7   :  { %1788 = vmatprep.mubr.bf16.mxu1 %v4486_v55  ;;  %v4571_v55 = vpack.c.bf16 %v123_v57, %v116_v53  ;;  %v4033_v53 = vld [vmem:[#allocation2 + $0x4c8] ss:$16 sps:$4 sm:$0xff]   ;;  %v4038_v57 = vld [vmem:[#allocation2 + $0x4ec] ss:$16 sps:$4 sm:$0xff]  }
  0xf9   :  { %1771 = vmatpush1.bf16.msra.mxu1 %v3988_v44  ;;  %v4086_v44 = vld [vmem:[#allocation6 + $0x64] ss:$8 sps:$4 sm:$0xff]  }
  0xfa   :  { %1772 = vmatprep.subr.bf16.mxu1 %v3993_v54  ;;  %v4084_v54 = vld [vmem:[#allocation6 + $0x60] ss:$8 sps:$4 sm:$0xff]  }
  0xfd   :  { %3411 = vmatmul.mubr.msk.bf16.vlgmr.msra.gmra.mrb[0].mxu0 %vm1378_vm0, %v4566_v48  ;;  %1773 = vmatpush1.bf16.msra.mxu1 %v3991_v7  ;;  %v4030_v7 = vld [vmem:[#allocation2 + $0x4a8] ss:$16 sps:$4 sm:$0xff]  }
  0xfe   :  { %1652 = vmatprep.mubr.bf16.mxu0 %v4371_v47  ;;  %1774 = vmatprep.subr.bf16.mxu1 %v3996_v51  ;;  %v4087_v51 = vld [vmem:[#allocation6 + $0x70] ss:$8 sps:$4 sm:$0xff]  }
  0xff   :  { %2388 = vmatpush1.bf16.msra.mxu0 %v4066_v18  ;;  %v4053_v18 = vld [vmem:[#allocation2 + $0x58c] ss:$16 sps:$4 sm:$0xff]  }
 0x100   :  { %2389 = vmatprep.subr.bf16.mxu0 %v4071_v22  ;;  %v4056_v22 = vld [vmem:[#allocation2 + $0x5ac] ss:$16 sps:$4 sm:$0xff]  }
 0x101   :  { %1775 = vmatpush1.bf16.msra.mxu1 %v3994_v52  ;;  %v4092_v52 = vld [vmem:[#allocation6 + $0x84] ss:$8 sps:$4 sm:$0xff]  }
 0x102   :  { %1776 = vmatprep.subr.bf16.mxu1 %v3999_v11  ;;  %v4090_v11 = vld [vmem:[#allocation6 + $0x80] ss:$8 sps:$4 sm:$0xff]  }
 0x103   :  { %2390 = vmatpush1.bf16.msra.mxu0 %v4069_v26  ;;  %v4059_v26 = vld [vmem:[#allocation2 + $0x5cc] ss:$16 sps:$4 sm:$0xff]  }
 0x104   :  { %2391 = vmatprep.subr.bf16.mxu0 %v4074_v12  ;;  %v4110_v12 = vld [vmem:[#allocation6 + $0xe4] ss:$8 sps:$4 sm:$0xff]  }
 0x105   :  { %3412 = vmatmul.mubr.msk.bf16.gmra.mrb[4].mxu0 %vm1378_vm0, %v4571_v55  ;;  %1777 = vmatpush1.bf16.msra.mxu1 %v3997_v58  ;;  %v4036_v58 = vld [vmem:[#allocation2 + $0x4e8] ss:$16 sps:$4 sm:$0xff]  }
 0x106   :  { %1662 = vmatprep.mubr.bf16.mxu0 %v4371_v47  ;;  %1778 = vmatprep.subr.bf16.mxu1 %v4002_v59  ;;  %v4093_v59 = vld [vmem:[#allocation6 + $0x90] ss:$8 sps:$4 sm:$0xff]  }
 0x107   :  { %2392 = vmatpush1.bf16.msra.mxu0 %v4072_v31  ;;  %v4062_v31 = vld [vmem:[#allocation2 + $0x5ec] ss:$16 sps:$4 sm:$0xff]  }
 0x108   :  { %2393 = vmatprep.subr.bf16.mxu0 %v4077_v29  ;;  %v4113_v29 = vld [vmem:[#allocation6 + $0xf4] ss:$8 sps:$4 sm:$0xff]  }
 0x109   :  { %1779 = vmatpush1.bf16.msra.mxu1 %v4000_v60  ;;  %v4098_v60 = vld [vmem:[#allocation6 + $0xa4] ss:$8 sps:$4 sm:$0xff]  }
 0x10a   :  { %1780 = vmatprep.subr.bf16.mxu1 %v4005_v0  ;;  %v4096_v0 = vld [vmem:[#allocation6 + $0xa0] ss:$8 sps:$4 sm:$0xff]  }
 0x10b   :  { %2394 = vmatpush1.bf16.msra.mxu0 %v4075_v37  ;;  %v4065_v37 = vld [vmem:[#allocation2 + $0x60c] ss:$16 sps:$4 sm:$0xff]  }
 0x10c   :  { %2395 = vmatprep.subr.bf16.mxu0 %v4080_v38  ;;  %v4063_v38 = vld [vmem:[#allocation2 + $0x608] ss:$16 sps:$4 sm:$0xff]  }
 0x10d   :  { %3413 = vmatmul.mubr.msk.bf16.gmra.mrb[8].mxu0 %vm1378_vm0, %v4576_v2  ;;  %1781 = vmatpush1.bf16.msra.mxu1 %v4003_v1  ;;  %v4042_v1 = vld [vmem:[#allocation2 + $0x528] ss:$16 sps:$4 sm:$0xff]  }
 0x10e   :  { %1672 = vmatprep.mubr.bf16.mxu0 %v4371_v47  ;;  %1782 = vmatprep.subr.bf16.mxu1 %v4008_v3  ;;  %v4047_v3 = vld [vmem:[#allocation2 + $0x54c] ss:$16 sps:$4 sm:$0xff]  }
 0x10f   :  { %2396 = vmatpush1.bf16.msra.mxu0 %v4078_v49  ;;  %v4116_v49 = vld [vmem:[#allocation6 + $0x104] ss:$8 sps:$4 sm:$0xff]  }
 0x111   :  { %1783 = vmatpush1.bf16.msra.mxu1 %v4006_v4  ;;  %v4104_v4 = vld [vmem:[#allocation6 + $0xc4] ss:$8 sps:$4 sm:$0xff]  }
 0x112   :  { %1784 = vmatprep.subr.bf16.mxu1 %v4011_v9  ;;  %v4102_v9 = vld [vmem:[#allocation6 + $0xc0] ss:$8 sps:$4 sm:$0xff]  }
 0x115   :  { %3414 = vmatmul.mubr.msk.bf16.gmra.mrb[12].mxu0 %vm1378_vm0, %v4581_v14  ;;  %1785 = vmatpush1.bf16.msra.mxu1 %v4009_v16  ;;  %v4107_v16 = vld [vmem:[#allocation6 + $0xd4] ss:$8 sps:$4 sm:$0xff]  }
 0x116   :  { %1786 = vmatprep.subr.bf16.mxu1 %v4014_v17  ;;  %v4048_v17 = vld [vmem:[#allocation2 + $0x568] ss:$16 sps:$4 sm:$0xff]  }
 0x119   :  { %1787 = vmatpush1.bf16.msra.mxu1 %v4012_v21  ;;  %v4051_v21 = vld [vmem:[#allocation2 + $0x588] ss:$16 sps:$4 sm:$0xff]  }
 0x11a   :  { %1829 = vmatprep.subr.bf16.mxu1 %v4017_v24  ;;  %v4054_v24 = vld [vmem:[#allocation2 + $0x5a8] ss:$16 sps:$4 sm:$0xff]  }
 0x11c   :  { %1789 = vmatmul.mubr.bf16.vlgmr.msra.gmra.mrb[16].mxu1 %v4492_v15  ;;  %v4083_v15 = vld [vmem:[#allocation6 + $0x54] ss:$8 sps:$4 sm:$0xff]  }
 0x11d   :  { %1830 = vmatpush1.bf16.msra.mxu1 %v4015_v27  ;;  %1798 = vmatprep.mubr.bf16.mxu1 %v4500_v34  ;;  %v4029_v34 = vld [vmem:[#allocation2 + $0x48c] ss:$16 sps:$4 sm:$0xff]  }
 0x11e   :  { %1831 = vmatprep.subr.bf16.mxu1 %v4020_v30  ;;  %2397 = vmatprep.subr.bf16.mxu0 %v4083_v15  ;;  %v4108_v27 = vld [vmem:[#allocation6 + $0xe0] ss:$8 sps:$4 sm:$0xff]   ;;  %v4057_v30 = vld [vmem:[#allocation2 + $0x5c8] ss:$16 sps:$4 sm:$0xff]  }
 0x11f   :  { %2398 = vmatpush1.bf16.msra.mxu0 %v4081_v43 }
 0x120   :  { %2399 = vmatprep.subr.bf16.mxu0 %v4086_v44 }
 0x121   :  { %1832 = vmatpush1.bf16.msra.mxu1 %v4018_v32  ;;  %v4111_v32 = vld [vmem:[#allocation6 + $0xf0] ss:$8 sps:$4 sm:$0xff]  }
 0x122   :  { %1833 = vmatprep.subr.bf16.mxu1 %v4023_v35  ;;  %v4060_v35 = vld [vmem:[#allocation2 + $0x5e8] ss:$16 sps:$4 sm:$0xff]  }
 0x123   :  { %2400 = vmatpush1.bf16.msra.mxu0 %v4084_v54 }
 0x124   :  { %1799 = vmatmul.mubr.bf16.gmra.mrb[20].mxu1 %v4503_v39  ;;  %v4089_v39 = vld [vmem:[#allocation6 + $0x74] ss:$8 sps:$4 sm:$0xff]  }
 0x125   :  { %1834 = vmatpush1.bf16.msra.mxu1 %v4021_v33  ;;  %1808 = vmatprep.mubr.bf16.mxu1 %v4512_v56  ;;  %v4035_v56 = vld [vmem:[#allocation2 + $0x4cc] ss:$16 sps:$4 sm:$0xff]  }
 0x126   :  { %1835 = vmatprep.subr.bf16.mxu1 %v4026_v40  ;;  %2401 = vmatprep.subr.bf16.mxu0 %v4089_v39  ;;  %v4627_v39 = vld [vmem:[#allocation4] sm:$0xf] }
 0x127   :  { %2402 = vmatpush1.bf16.msra.mxu0 %v4087_v51 }
 0x128   :  { %2403 = vmatprep.subr.bf16.mxu0 %v4092_v52 }
 0x129   :  { %1836 = vmatpush1.bf16.msra.mxu1 %v4024_v41 }
 0x12a   :  { %1837 = vmatprep.subr.bf16.mxu1 %v4029_v34 }
 0x12b   :  { %2404 = vmatpush1.bf16.msra.mxu0 %v4090_v11 }
 0x12c   :  { %1809 = vmatmul.mubr.bf16.gmra.mrb[24].mxu1 %v4515_v61  ;;  %v4095_v61 = vld [vmem:[#allocation6 + $0x94] ss:$8 sps:$4 sm:$0xff]  }
 0x12d   :  { %1838 = vmatpush1.bf16.msra.mxu1 %v4027_v45  ;;  %1818 = vmatprep.mubr.bf16.mxu1 %v4524_v13  ;;  %v4041_v13 = vld [vmem:[#allocation2 + $0x50c] ss:$16 sps:$4 sm:$0xff]  }
 0x12e   :  { %1839 = vmatprep.subr.bf16.mxu1 %v4032_v46  ;;  %2405 = vmatprep.subr.bf16.mxu0 %v4095_v61 }
 0x12f   :  { %2406 = vmatpush1.bf16.msra.mxu0 %v4093_v59 }
 0x130   :  { %2407 = vmatprep.subr.bf16.mxu0 %v4098_v60 }
 0x131   :  { %1840 = vmatpush1.bf16.msra.mxu1 %v4030_v7 }
 0x132   :  { %1841 = vmatprep.subr.bf16.mxu1 %v4035_v56 }
 0x133   :  { %2408 = vmatpush1.bf16.msra.mxu0 %v4096_v0  ;;  %v4114_v0 = vld [vmem:[#allocation6 + $0x100] ss:$8 sps:$4 sm:$0xff]  }
 0x134   :  { %1819 = vmatmul.mubr.bf16.gmra.mrb[28].mxu1 %v4527_v19  ;;  %v4101_v19 = vld [vmem:[#allocation6 + $0xb4] ss:$8 sps:$4 sm:$0xff]  }
 0x135   :  { %1842 = vmatpush1.bf16.msra.mxu1 %v4033_v53  ;;  %1861 = vmatprep.mubr.bf16.mxu1 %v4533_v28  ;;  %v4099_v28 = vld [vmem:[#allocation6 + $0xb0] ss:$8 sps:$4 sm:$0xff]  }
 0x136   :  { %1843 = vmatprep.subr.bf16.mxu1 %v4038_v57  ;;  %2409 = vmatprep.subr.bf16.mxu0 %v4101_v19 }
 0x137   :  { %2410 = vmatpush1.bf16.msra.mxu0 %v4099_v28 }
 0x138   :  { %2411 = vmatprep.subr.bf16.mxu0 %v4104_v4 }
 0x139   :  { %1844 = vmatpush1.bf16.msra.mxu1 %v4036_v58 }
 0x13a   :  { %1845 = vmatprep.subr.bf16.mxu1 %v4041_v13 }
 0x13b   :  { %2412 = vmatpush1.bf16.msra.mxu0 %v4102_v9 }
 0x13c   :  { %2413 = vmatprep.subr.bf16.mxu0 %v4107_v16 }
 0x13d   :  { %1846 = vmatpush1.bf16.msra.mxu1 %v4039_v62 }
 0x13e   :  { %1847 = vmatprep.subr.bf16.mxu1 %v4044_v63 }
 0x13f   :  { %2414 = vmatpush1.bf16.msra.mxu0 %v4105_v20 }
 0x140   :  { %2415 = vmatprep.subr.bf16.mxu0 %v4110_v12 }
 0x141   :  { %1848 = vmatpush1.bf16.msra.mxu1 %v4042_v1  ;;  %v4119_v1 = vld [vmem:[#allocation6 + $0x114] ss:$8 sps:$4 sm:$0xff]  }
 0x142   :  { %1849 = vmatprep.subr.bf16.mxu1 %v4047_v3 }
 0x143   :  { %2416 = vmatpush1.bf16.msra.mxu0 %v4108_v27  ;;  %v4120_v27 = vld [vmem:[#allocation6 + $0x120] ss:$8 sps:$4 sm:$0xff]  }
 0x144   :  { %2417 = vmatprep.subr.bf16.mxu0 %v4113_v29 }
 0x145   :  { %1850 = vmatpush1.bf16.msra.mxu1 %v4045_v5 }
 0x146   :  { %1851 = vmatprep.subr.bf16.mxu1 %v4050_v8 }
 0x147   :  { %2418 = vmatpush1.bf16.msra.mxu0 %v4111_v32 }
 0x148   :  { %2460 = vmatprep.subr.bf16.mxu0 %v4116_v49 }
 0x149   :  { %1852 = vmatpush1.bf16.msra.mxu1 %v4048_v17 }
 0x14a   :  { %1853 = vmatprep.subr.bf16.mxu1 %v4053_v18  ;;  %v4117_v18 = vld [vmem:[#allocation6 + $0x110] ss:$8 sps:$4 sm:$0xff]  }
 0x14d   :  { %1854 = vmatpush1.bf16.msra.mxu1 %v4051_v21 }
 0x14e   :  { %1855 = vmatprep.subr.bf16.mxu1 %v4056_v22  ;;  %v4122_v22 = vld [vmem:[#allocation6 + $0x124] ss:$8 sps:$4 sm:$0xff]  }
 0x151   :  { %1856 = vmatpush1.bf16.msra.mxu1 %v4054_v24 }
 0x152   :  { %1857 = vmatprep.subr.bf16.mxu1 %v4059_v26 }
 0x155   :  { %1858 = vmatpush1.bf16.msra.mxu1 %v4057_v30 }
 0x156   :  { %1859 = vmatprep.subr.bf16.mxu1 %v4062_v31  ;;  %v4125_v31 = vld [vmem:[#allocation6 + $0x134] ss:$8 sps:$4 sm:$0xff]  }
 0x159   :  { %1860 = vmatpush1.bf16.msra.mxu1 %v4060_v35 }
 0x15a   :  { %1902 = vmatprep.subr.bf16.mxu1 %v4065_v37 }
 0x15c   :  { %1862 = vmatmul.mubr.bf16.vlgmr.msra.gmra.mrb[16].mxu1 %v4536_v6 }
 0x15d   :  { %1903 = vmatpush1.bf16.msra.mxu1 %v4063_v38  ;;  %1871 = vmatprep.mubr.bf16.mxu1 %v4538_v10 }
 0x164   :  { %1872 = vmatmul.mubr.bf16.gmra.mrb[20].mxu1 %v4544_v23 }
 0x165   :  { %1881 = vmatprep.mubr.bf16.mxu1 %v4546_v25 }
 0x16c   :  { %1882 = vmatmul.mubr.bf16.gmra.mrb[24].mxu1 %v4552_v50 }
 0x16d   :  { %1891 = vmatprep.mubr.bf16.mxu1 %v4554_v36 }
 0x16f   :  { %v1425_v33 = vpop.f32.mrb[0].mxu1 }
 0x170   :  { %v1427_v40 = vpop.f32.mrb[1].mxu1 }
 0x171   :  { %v1429_v15 = vpop.f32.mrb[2].mxu1 }
 0x172   :  { %v1431_v41 = vpop.f32.mrb[3].mxu1 }
 0x174   :  { %1892 = vmatmul.mubr.bf16.gmra.mrb[28].mxu1 %v4560_v42 }
 0x175   :  { %1934 = vmatprep.mubr.bf16.mxu1 %v4371_v47 }
 0x177   :  { %v1435_v6 = vpop.f32.mrb[4].mxu1 }
 0x178   :  { %v1437_v10 = vpop.f32.mrb[5].mxu1 }
 0x179   :  { %v1439_v23 = vpop.f32.mrb[6].mxu1 }
 0x17a   :  { %v1441_v25 = vpop.f32.mrb[7].mxu1 }
 0x17c   :  { %3415 = vmatmul.mubr.msk.bf16.vlgmr.msra.gmra.mrb[16].mxu1 %vm1378_vm0, %v4566_v48 }
 0x17d   :  { %1944 = vmatprep.mubr.bf16.mxu1 %v4371_v47 }
 0x17f   :  { %v1445_v50 = vpop.f32.mrb[8].mxu1 }
 0x180   :  { %v1447_v36 = vpop.f32.mrb[9].mxu1 }
 0x181   :  { %v1449_v34 = vpop.f32.mrb[10].mxu1 }
 0x182   :  { %v4607_v42 = vpop.f32.mrb[11].mxu1 }
 0x184   :  { %3416 = vmatmul.mubr.msk.bf16.gmra.mrb[20].mxu1 %vm1378_vm0, %v4571_v55  ;;  %v378_v55 = vlaneseq }
 0x185   :  { %1954 = vmatprep.mubr.bf16.mxu1 %v4371_v47 }
 0x186   :  { %v4622_v46 = vshrl.u32 %v378_v55, 7  ;;  %v4131_v55 = vld [vmem:[#allocation6 + $0x154] ss:$8 sps:$4 sm:$0xff]  }
 0x187   :  { %v4609_v43 = vpop.f32.mrb[12].mxu1 }
 0x188   :  { %v4611_v44 = vpop.f32.mrb[13].mxu1  ;;  %v4625_v54 = vsub.s32 0, %v4622_v46  ;;  %v4630_v7 = vsub.s32 1, %v4622_v46 }
 0x189   :  { %v4615_v48 = vpop.f32.mrb[14].mxu1 }
 0x18a   :  { %v4618_v45 = vpop.f32.mrb[15].mxu1 }
 0x18c   :  { %3417 = vmatmul.mubr.msk.bf16.gmra.mrb[24].mxu1 %vm1378_vm0, %v4576_v2  ;;  %v4634_v2 = vrot.slane %v4627_v39, %v4625_v54 }
 0x18d   :  { %1964 = vmatprep.mubr.bf16.mxu1 %v4371_v47  ;;  %v4638_v47 = vrot.slane %v4627_v39, %v4630_v7 }
 0x18e   :  { %v1430_v52 = vadd.f32 %v1429_v15, %v4634_v2  ;;  %v1436_v19 = vadd.f32 %v1435_v6, %v4634_v2  ;;  %v1440_v4 = vadd.f32 %v1439_v23, %v4634_v2  ;;  %v1446_v30 = vadd.f32 %v1445_v50, %v4634_v2  ;;  %v4123_v15 = vld [vmem:[#allocation6 + $0x130] ss:$8 sps:$4 sm:$0xff]  }
 0x18f   :  { %v1428_v56 = vadd.f32 %v1427_v40, %v4638_v47  ;;  %v1432_v11 = vadd.f32 %v1431_v41, %v4638_v47  ;;  %v1438_v3 = vadd.f32 %v1437_v10, %v4638_v47  ;;  %v1442_v9 = vadd.f32 %v1441_v25, %v4638_v47  ;;  %v4128_v10 = vld [vmem:[#allocation6 + $0x144] ss:$8 sps:$4 sm:$0xff]  }
 0x190   :  { %v1448_v29 = vadd.f32 %v1447_v36, %v4638_v47  ;;  %v1450_v35 = vadd.f32 %v1449_v34, %v4634_v2  ;;  %v4126_v36 = vld [vmem:[#allocation6 + $0x140] ss:$8 sps:$4 sm:$0xff]   ;;  %v1456_v34 = vadd.f32 %v4609_v43, %v4634_v2  ;;  %v4129_v43 = vld [vmem:[#allocation6 + $0x150] ss:$8 sps:$4 sm:$0xff]  }
 0x194   :  { %3418 = vmatmul.mubr.msk.bf16.gmra.mrb[28].mxu1 %vm1378_vm0, %v4581_v14  ;;  %v1426_v14 = vadd.f32 %v1425_v33, %v4634_v2  ;;  %v1452_v33 = vadd.f32 %v4607_v42, %v4638_v47  ;;  %v1458_v42 = vadd.f32 %v4611_v44, %v4638_v47 }
 0x1d0   :  { %v1644_v51 = vpop.f32.mrb[0].mxu0 }
 0x1d1   :  { %v3599_v53 = vadd.f32 %v1644_v51, %v1426_v14  ;;  %v1646_v57 = vpop.f32.mrb[1].mxu0 }
 0x1d2   :  { %v3601_v61 = vadd.f32 %v1646_v57, %v1428_v56  ;;  %v1648_v58 = vpop.f32.mrb[2].mxu0  ;;  %v1460_v56 = vadd.f32 %v4615_v48, %v4634_v2  ;;  %v4137_v48 = vld [vmem:[#allocation6 + $0x174] ss:$8 sps:$4 sm:$0xff]   ;;  %v4135_v2 = vld [vmem:[#allocation6 + $0x170] ss:$8 sps:$4 sm:$0xff]  }
 0x1d3   :  { %v3603_v13 = vadd.f32 %v1648_v58, %v1430_v52  ;;  %v1650_v59 = vpop.f32.mrb[3].mxu0 }
 0x1d4   :  { %v3605_v60 = vadd.f32 %v1650_v59, %v1432_v11 }
 0x1d5   :  { %v1975_v62 = vpack.c.bf16 %v3603_v13, %v3599_v53  ;;  %v1462_v53 = vadd.f32 %v4618_v45, %v4638_v47  ;;  %v4134_v13 = vld [vmem:[#allocation6 + $0x164] ss:$8 sps:$4 sm:$0xff]   ;;  %v4138_v47 = vld [vmem:[#allocation6 + $0x180] ss:$8 sps:$4 sm:$0xff]  }
 0x1d6   :  { %v1976_v63 = vpack.c.bf16 %v3605_v60, %v3601_v61  ;;  %v4140_v45 = vld [vmem:[#allocation6 + $0x184] ss:$8 sps:$4 sm:$0xff]  }
 0x1d8   :  { %v1654_v28 = vpop.f32.mrb[4].mxu0  ;;  %2419 = vmatprep.mubr.bf16.mxu0 %v1976_v63  ;;  %v4143_v63 = vld [vmem:[#allocation6 + $0x194] ss:$8 sps:$4 sm:$0xff]  }
 0x1d9   :  { %v3607_v5 = vadd.f32 %v1654_v28, %v1436_v19  ;;  %v1656_v8 = vpop.f32.mrb[5].mxu0  ;;  %2420 = vmatmul.mubr.bf16.vlgmr.msra.gmra.mrb[16].mxu0 %v1975_v62  ;;  %v4132_v62 = vld [vmem:[#allocation6 + $0x160] ss:$8 sps:$4 sm:$0xff]   ;;  %v4146_v19 = vld [vmem:[#allocation6 + $0x1a4] ss:$8 sps:$4 sm:$0xff]  }
 0x1da   :  { %v3609_v16 = vadd.f32 %v1656_v8, %v1438_v3  ;;  %v1658_v17 = vpop.f32.mrb[6].mxu0  ;;  %2461 = vmatpush1.bf16.msra.mxu0 %v4114_v0  ;;  %v4141_v0 = vld [vmem:[#allocation6 + $0x190] ss:$8 sps:$4 sm:$0xff]   ;;  %v4149_v3 = vld [vmem:[#allocation6 + $0x1b4] ss:$8 sps:$4 sm:$0xff]  }
 0x1db   :  { %v3611_v20 = vadd.f32 %v1658_v17, %v1440_v4  ;;  %v1660_v21 = vpop.f32.mrb[7].mxu0  ;;  %2462 = vmatprep.subr.bf16.mxu0 %v4119_v1  ;;  %v4144_v1 = vld [vmem:[#allocation6 + $0x1a0] ss:$8 sps:$4 sm:$0xff]   ;;  %v4147_v28 = vld [vmem:[#allocation6 + $0x1b0] ss:$8 sps:$4 sm:$0xff]  }
 0x1dc   :  { %v3613_v24 = vadd.f32 %v1660_v21, %v1442_v9  ;;  %v4152_v4 = vld [vmem:[#allocation6 + $0x1c4] ss:$8 sps:$4 sm:$0xff]   ;;  %v4155_v8 = vld [vmem:[#allocation6 + $0x1d4] ss:$8 sps:$4 sm:$0xff]   ;;  %v4153_v9 = vld [vmem:[#allocation6 + $0x1d0] ss:$8 sps:$4 sm:$0xff]  }
 0x1dd   :  { %v1979_v26 = vpack.c.bf16 %v3611_v20, %v3607_v5  ;;  %v4150_v5 = vld [vmem:[#allocation6 + $0x1c0] ss:$8 sps:$4 sm:$0xff]   ;;  %v4159_v20 = vld [vmem:[#allocation6 + $0x1f0] ss:$8 sps:$4 sm:$0xff]   ;;  %v388_v21 = vsub.s32 2, %v4622_v46 }
 0x1de   :  { %v1980_v12 = vpack.c.bf16 %v3613_v24, %v3609_v16  ;;  %2463 = vmatpush1.bf16.msra.mxu0 %v4117_v18  ;;  %v4158_v16 = vld [vmem:[#allocation6 + $0x1e4] ss:$8 sps:$4 sm:$0xff]   ;;  %v4156_v17 = vld [vmem:[#allocation6 + $0x1e0] ss:$8 sps:$4 sm:$0xff]   ;;  %v4161_v18 = vld [vmem:[#allocation6 + $0x1f4] ss:$8 sps:$4 sm:$0xff]  }
 0x1df   :  { %2464 = vmatprep.subr.bf16.mxu0 %v4122_v22  ;;  %v392_v22 = vsub.s32 3, %v4622_v46  ;;  %v389_v24 = vrot.slane %v4627_v39, %v388_v21 }
 0x1e0   :  { %v1664_v32 = vpop.f32.mrb[8].mxu0  ;;  %2429 = vmatprep.mubr.bf16.mxu0 %v1980_v12 }
 0x1e1   :  { %v3615_v37 = vadd.f32 %v1664_v32, %v1446_v30  ;;  %v1666_v38 = vpop.f32.mrb[9].mxu0  ;;  %2430 = vmatmul.mubr.bf16.gmra.mrb[20].mxu0 %v1979_v26  ;;  %v393_v12 = vrot.slane %v4627_v39, %v392_v22 }
 0x1e2   :  { %v3617_v40 = vadd.f32 %v1666_v38, %v1448_v29  ;;  %v1668_v49 = vpop.f32.mrb[10].mxu0  ;;  %2465 = vmatpush1.bf16.msra.mxu0 %v4120_v27 }
 0x1e3   :  { %v3619_v41 = vadd.f32 %v1668_v49, %v1450_v35  ;;  %v1670_v6 = vpop.f32.mrb[11].mxu0  ;;  %2466 = vmatprep.subr.bf16.mxu0 %v4125_v31 }
 0x1e4   :  { %v3621_v23 = vadd.f32 %v1670_v6, %v1452_v33 }
 0x1e5   :  { %v1983_v25 = vpack.c.bf16 %v3619_v41, %v3615_v37 }
 0x1e6   :  { %v1984_v50 = vpack.c.bf16 %v3621_v23, %v3617_v40  ;;  %2467 = vmatpush1.bf16.msra.mxu0 %v4123_v15 }
 0x1e7   :  { %2468 = vmatprep.subr.bf16.mxu0 %v4128_v10 }
 0x1e8   :  { %v1674_v14 = vpop.f32.mrb[12].mxu0  ;;  %2439 = vmatprep.mubr.bf16.mxu0 %v1984_v50 }
 0x1e9   :  { %v3623_v51 = vadd.f32 %v1674_v14, %v1456_v34  ;;  %v1676_v52 = vpop.f32.mrb[13].mxu0  ;;  %2440 = vmatmul.mubr.bf16.gmra.mrb[24].mxu0 %v1983_v25 }
 0x1ea   :  { %v3625_v57 = vadd.f32 %v1676_v52, %v1458_v42  ;;  %v1678_v11 = vpop.f32.mrb[14].mxu0  ;;  %2469 = vmatpush1.bf16.msra.mxu0 %v4126_v36 }
 0x1eb   :  { %v3627_v61 = vadd.f32 %v1678_v11, %v1460_v56  ;;  %v1680_v58 = vpop.f32.mrb[15].mxu0  ;;  %2470 = vmatprep.subr.bf16.mxu0 %v4131_v55 }
 0x1ec   :  { %v3629_v44 = vadd.f32 %v1680_v58, %v1462_v53 }
 0x1ed   :  { %v1987_v59 = vpack.c.bf16 %v3627_v61, %v3623_v51 }
 0x1ee   :  { %v1988_v60 = vpack.c.bf16 %v3629_v44, %v3625_v57  ;;  %2471 = vmatpush1.bf16.msra.mxu0 %v4129_v43 }
 0x1ef   :  { %2472 = vmatprep.subr.bf16.mxu0 %v4134_v13 }
 0x1f0   :  { %2449 = vmatprep.mubr.bf16.mxu0 %v1988_v60 }
 0x1f1   :  { %2450 = vmatmul.mubr.bf16.gmra.mrb[28].mxu0 %v1987_v59 }
 0x1f2   :  { %2473 = vmatpush1.bf16.msra.mxu0 %v4132_v62 }
 0x1f3   :  { %2474 = vmatprep.subr.bf16.mxu0 %v4137_v48  ;;  %v4162_v48 = vld [vmem:[#allocation7 + $0x40] sm:$0xff]  }
 0x1f4   :  { %3582 = vmatprep.subr.bf16.mxu1 %v4162_v48 }
 0x1f6   :  { %2475 = vmatpush1.bf16.msra.mxu0 %v4135_v2  ;;  %v4163_v2 = vld [vmem:[#allocation7] sm:$0xff]  }
 0x1f7   :  { %2476 = vmatprep.subr.bf16.mxu0 %v4140_v45  ;;  %3590 = vmatpush3.bf16.msra.mxu1 %v4163_v2  ;;  %v4164_v45 = vld [vmem:[#allocation7 + $0x48] sm:$0xff]  }
 0x1f8   :  { %3583 = vmatprep.subr.bf16.mxu1 %v4164_v45 }
 0x1fa   :  { %2477 = vmatpush1.bf16.msra.mxu0 %v4138_v47  ;;  %v4165_v47 = vld [vmem:[#allocation7 + $0x8] sm:$0xff]  }
 0x1fb   :  { %2478 = vmatprep.subr.bf16.mxu0 %v4143_v63  ;;  %3591 = vmatpush3.bf16.msra.mxu1 %v4165_v47  ;;  %v4166_v63 = vld [vmem:[#allocation7 + $0x50] sm:$0xff]  }
 0x1fc   :  { %3584 = vmatprep.subr.bf16.mxu1 %v4166_v63 }
 0x1fe   :  { %2479 = vmatpush1.bf16.msra.mxu0 %v4141_v0  ;;  %v4167_v0 = vld [vmem:[#allocation7 + $0x10] sm:$0xff]  }
 0x1ff   :  { %2480 = vmatprep.subr.bf16.mxu0 %v4146_v19  ;;  %3592 = vmatpush3.bf16.msra.mxu1 %v4167_v0  ;;  %v4168_v19 = vld [vmem:[#allocation7 + $0x58] sm:$0xff]  }
 0x200   :  { %3585 = vmatprep.subr.bf16.mxu1 %v4168_v19 }
 0x202   :  { %2481 = vmatpush1.bf16.msra.mxu0 %v4144_v1  ;;  %v4169_v1 = vld [vmem:[#allocation7 + $0x18] sm:$0xff]  }
 0x203   :  { %2482 = vmatprep.subr.bf16.mxu0 %v4149_v3  ;;  %3593 = vmatpush3.bf16.msra.mxu1 %v4169_v1  ;;  %v4170_v3 = vld [vmem:[#allocation7 + $0x60] sm:$0xff]  }
 0x204   :  { %3586 = vmatprep.subr.bf16.mxu1 %v4170_v3 }
 0x206   :  { %2483 = vmatpush1.bf16.msra.mxu0 %v4147_v28  ;;  %v4171_v28 = vld [vmem:[#allocation7 + $0x20] sm:$0xff]  }
 0x207   :  { %2484 = vmatprep.subr.bf16.mxu0 %v4152_v4  ;;  %3594 = vmatpush3.bf16.msra.mxu1 %v4171_v28  ;;  %v4172_v4 = vld [vmem:[#allocation7 + $0x68] sm:$0xff]  }
 0x208   :  { %3587 = vmatprep.subr.bf16.mxu1 %v4172_v4 }
 0x20a   :  { %2485 = vmatpush1.bf16.msra.mxu0 %v4150_v5  ;;  %v4173_v5 = vld [vmem:[#allocation7 + $0x28] sm:$0xff]  }
 0x20b   :  { %2486 = vmatprep.subr.bf16.mxu0 %v4155_v8  ;;  %v4174_v8 = vld [vmem:[#allocation7 + $0x70] sm:$0xff]   ;;  %3595 = vmatpush3.bf16.msra.mxu1 %v4173_v5 }
 0x20c   :  { %3588 = vmatprep.subr.bf16.mxu1 %v4174_v8 }
 0x20e   :  { %2487 = vmatpush1.bf16.msra.mxu0 %v4153_v9  ;;  %v4175_v9 = vld [vmem:[#allocation7 + $0x30] sm:$0xff]  }
 0x20f   :  { %2488 = vmatprep.subr.bf16.mxu0 %v4158_v16  ;;  %v4176_v16 = vld [vmem:[#allocation7 + $0x78] sm:$0xff]   ;;  %3596 = vmatpush3.bf16.msra.mxu1 %v4175_v9 }
 0x210   :  { %3589 = vmatprep.subr.bf16.mxu1 %v4176_v16 }
 0x212   :  { %2489 = vmatpush1.bf16.msra.mxu0 %v4156_v17  ;;  %v4177_v17 = vld [vmem:[#allocation7 + $0x38] sm:$0xff]  }
 0x213   :  { %2490 = vmatprep.subr.bf16.mxu0 %v4161_v18  ;;  %3597 = vmatpush3.bf16.msra.mxu1 %v4177_v17  ;;  %v2055_v18 = vld [vmem:[%s5010_s4] sm:$0x3] }
 0x214   :  { %v4672_v21 = vrot.slane %v2055_v18, %v4625_v54  ;;  %v4675_v22 = vrot.slane %v2055_v18, %v4630_v7 }
 0x216   :  { %2491 = vmatpush1.bf16.msra.mxu0 %v4159_v20  ;;  %v3483_v20 = vld [vmem:[%s5006_s0 + $0x3] ss:$4 sm:$0x3] }
 0x217   :  { %3542 = vmatprep.subr.bf16.mxu0 %v4162_v48 }
 0x24f   :  { %v1936_v26 = vpop.f32.mrb[16].mxu1 }
 0x250   :  { %v1938_v27 = vpop.f32.mrb[17].mxu1  ;;  %v3630_v31 = vadd.f32 %v1936_v26, %v389_v24  ;;  %v4681_v26 = vrot.slane %v3483_v20, %v4625_v54 }
 0x251   :  { %v1940_v30 = vpop.f32.mrb[18].mxu1  ;;  %v3631_v35 = vadd.f32 %v1938_v27, %v393_v12  ;;  %v4684_v27 = vrot.slane %v3483_v20, %v4630_v7 }
 0x252   :  { %v3632_v29 = vadd.f32 %v1940_v30, %v389_v24  ;;  %v1942_v32 = vpop.f32.mrb[19].mxu1 }
 0x253   :  { %v3633_v37 = vadd.f32 %v1942_v32, %v393_v12 }
 0x254   :  { %v1977_v38 = vpack.c.bf16 %v3632_v29, %v3630_v31 }
 0x255   :  { %v1978_v33 = vpack.c.bf16 %v3633_v37, %v3631_v35 }
 0x257   :  { %v1946_v40 = vpop.f32.mrb[20].mxu1  ;;  %2492 = vmatprep.mubr.bf16.mxu0 %v1978_v33 }
 0x258   :  { %v1948_v49 = vpop.f32.mrb[21].mxu1  ;;  %2493 = vmatmul.mubr.bf16.vlgmr.msra.gmra.mrb[16].mxu0 %v1977_v38  ;;  %v3634_v46 = vadd.f32 %v1946_v40, %v389_v24 }
 0x259   :  { %v1950_v15 = vpop.f32.mrb[22].mxu1  ;;  %v3635_v10 = vadd.f32 %v1948_v49, %v393_v12  ;;  %3543 = vmatpush3.bf16.msra.mxu0 %v4163_v2 }
 0x25a   :  { %v3636_v41 = vadd.f32 %v1950_v15, %v389_v24  ;;  %v1952_v6 = vpop.f32.mrb[23].mxu1  ;;  %3544 = vmatprep.subr.bf16.mxu0 %v4164_v45 }
 0x25b   :  { %v3637_v23 = vadd.f32 %v1952_v6, %v393_v12  ;;  %v3485_v6 = vld [vmem:[%s5006_s0 + $0x1] ss:$4 sm:$0x3] }
 0x25c   :  { %v1981_v39 = vpack.c.bf16 %v3636_v41, %v3634_v46 }
 0x25d   :  { %v1982_v25 = vpack.c.bf16 %v3637_v23, %v3635_v10  ;;  %3545 = vmatpush3.bf16.msra.mxu0 %v4165_v47 }
 0x25e   :  { %3546 = vmatprep.subr.bf16.mxu0 %v4166_v63 }
 0x25f   :  { %v1956_v50 = vpop.f32.mrb[24].mxu1  ;;  %2502 = vmatprep.mubr.bf16.mxu0 %v1982_v25 }
 0x260   :  { %v1958_v36 = vpop.f32.mrb[25].mxu1  ;;  %2503 = vmatmul.mubr.bf16.gmra.mrb[20].mxu0 %v1981_v39  ;;  %v3638_v55 = vadd.f32 %v1956_v50, %v389_v24 }
 0x261   :  { %v1960_v34 = vpop.f32.mrb[26].mxu1  ;;  %v3639_v56 = vadd.f32 %v1958_v36, %v393_v12  ;;  %3547 = vmatpush3.bf16.msra.mxu0 %v4167_v0 }
 0x262   :  { %v3640_v42 = vadd.f32 %v1960_v34, %v389_v24  ;;  %v1962_v14 = vpop.f32.mrb[27].mxu1  ;;  %3548 = vmatprep.subr.bf16.mxu0 %v4168_v19 }
 0x263   :  { %v3641_v51 = vadd.f32 %v1962_v14, %v393_v12 }
 0x264   :  { %v1985_v52 = vpack.c.bf16 %v3640_v42, %v3638_v55  ;;  %v4722_v42 = vrot.slane %v3485_v6, %v4630_v7 }
 0x265   :  { %v1986_v53 = vpack.c.bf16 %v3641_v51, %v3639_v56  ;;  %3549 = vmatpush3.bf16.msra.mxu0 %v4169_v1 }
 0x266   :  { %3550 = vmatprep.subr.bf16.mxu0 %v4170_v3 }
 0x267   :  { %v1966_v57 = vpop.f32.mrb[28].mxu1  ;;  %2512 = vmatprep.mubr.bf16.mxu0 %v1986_v53 }
 0x268   :  { %v1968_v11 = vpop.f32.mrb[29].mxu1  ;;  %2513 = vmatmul.mubr.bf16.gmra.mrb[24].mxu0 %v1985_v52  ;;  %v3642_v61 = vadd.f32 %v1966_v57, %v389_v24 }
 0x269   :  { %v1970_v43 = vpop.f32.mrb[30].mxu1  ;;  %v3643_v44 = vadd.f32 %v1968_v11, %v393_v12  ;;  %3551 = vmatpush3.bf16.msra.mxu0 %v4171_v28 }
 0x26a   :  { %v3644_v58 = vadd.f32 %v1970_v43, %v389_v24  ;;  %v1972_v13 = vpop.f32.mrb[31].mxu1  ;;  %3552 = vmatprep.subr.bf16.mxu0 %v4172_v4  ;;  %v3484_v24 = vld [vmem:[%s5006_s0 + $0x2] ss:$4 sm:$0x3] }
 0x26b   :  { %v3645_v59 = vadd.f32 %v1972_v13, %v393_v12  ;;  %v4690_v29 = vrot.slane %v3484_v24, %v4625_v54  ;;  %v4696_v37 = vrot.slane %v3484_v24, %v4630_v7  ;;  %v4733_v13 = vrot.slane %v3485_v6, %v4625_v54 }
 0x26c   :  { %v1989_v60 = vpack.c.bf16 %v3644_v58, %v3642_v61  ;;  %v2812_v61 = vld [vmem:[%s5006_s0] ss:$4 sm:$0x3] }
 0x26d   :  { %v1990_v62 = vpack.c.bf16 %v3645_v59, %v3643_v44  ;;  %3553 = vmatpush3.bf16.msra.mxu0 %v4173_v5  ;;  %v4742_v19 = vrot.slane %v2812_v61, %v4630_v7 }
 0x26e   :  { %3554 = vmatprep.subr.bf16.mxu0 %v4174_v8 }
 0x26f   :  { %2522 = vmatprep.mubr.bf16.mxu0 %v1990_v62 }
 0x270   :  { %2523 = vmatmul.mubr.bf16.gmra.mrb[28].mxu0 %v1989_v60 }
 0x271   :  { %3555 = vmatpush3.bf16.msra.mxu0 %v4175_v9 }
 0x272   :  { %3556 = vmatprep.subr.bf16.mxu0 %v4176_v16 }
 0x275   :  { %3557 = vmatpush3.bf16.msra.mxu0 %v4177_v17 }
 0x32b   :  { %v2494_v12 = vpop.f32.mrb[16].mxu0 }
 0x32c   :  { %v4687_v30 = vadd.f32 %v2494_v12, %v4672_v21  ;;  %v2496_v31 = vpop.f32.mrb[17].mxu0  ;;  %v4754_v12 = vrot.slane %v2812_v61, %v4625_v54 }
 0x32d   :  { %v4693_v32 = vadd.f32 %v2496_v31, %v4675_v22  ;;  %v2498_v35 = vpop.f32.mrb[18].mxu0 }
 0x32e   :  { %v4699_v38 = vadd.f32 %v2498_v35, %v4672_v21  ;;  %v2500_v33 = vpop.f32.mrb[19].mxu0  ;;  %v2533_v40 = vmul.f32 0.0029028396, %v4687_v30  ;;  %v2706_v49 = vmul.f32 %v4687_v30, %v4681_v26 }
 0x32f   :  { %v4705_v15 = vadd.f32 %v2500_v33, %v4675_v22  ;;  %v2534_v46 = vmul.f32 0.0029028396, %v4693_v32  ;;  %v2707_v41 = vmul.f32 %v4693_v32, %v4684_v27 }
 0x330   :  { %v2535_v10 = vmul.f32 0.0029028396, %v4699_v38  ;;  %v2549_v23 = vadd.f32 0.0243559, %v2533_v40  ;;  %v2708_v39 = vmul.f32 %v4699_v38, %v4681_v26  ;;  %v2735_v25 = vadd.f32 %v4690_v29, %v2706_v49 }
 0x331   :  { %v2536_v50 = vmul.f32 0.0029028396, %v4705_v15  ;;  %v2550_v36 = vadd.f32 0.0243559, %v2534_v46  ;;  %v2709_v34 = vmul.f32 %v4705_v15, %v4684_v27  ;;  %v2736_v55 = vadd.f32 %v4696_v37, %v2707_v41 }
 0x332   :  { %v2551_v14 = vadd.f32 0.0243559, %v2535_v10  ;;  %v2565_v56 = vmul.f32 %v4687_v30, %v2549_v23  ;;  %v2737_v51 = vadd.f32 %v4690_v29, %v2708_v39  ;;  %v2751_v60 = vmul.f32 %v4687_v30, %v2735_v25 }
 0x333   :  { %v2504_v52 = vpop.f32.mrb[20].mxu0  ;;  %v2552_v53 = vadd.f32 0.0243559, %v2536_v50  ;;  %v2566_v57 = vmul.f32 %v4693_v32, %v2550_v36  ;;  %v2738_v11 = vadd.f32 %v4696_v37, %v2709_v34  ;;  %v2752_v43 = vmul.f32 %v4693_v32, %v2736_v55 }
 0x334   :  { %v2506_v58 = vpop.f32.mrb[21].mxu0  ;;  %v2567_v44 = vmul.f32 %v4699_v38, %v2551_v14  ;;  %v2581_v59 = vadd.f32 0.1302272, %v2565_v56  ;;  %v2753_v47 = vmul.f32 %v4699_v38, %v2737_v51  ;;  %v2780_v17 = vadd.f32 %v4733_v13, %v2751_v60 }
 0x335   :  { %v2508_v62 = vpop.f32.mrb[22].mxu0  ;;  %v2568_v48 = vmul.f32 %v4705_v15, %v2552_v53  ;;  %v2582_v2 = vadd.f32 0.1302272, %v2566_v57  ;;  %v2754_v45 = vmul.f32 %v4705_v15, %v2738_v11  ;;  %v2781_v0 = vadd.f32 %v4722_v42, %v2752_v43 }
 0x336   :  { %v2510_v63 = vpop.f32.mrb[23].mxu0  ;;  %v2583_v1 = vadd.f32 0.1302272, %v2567_v44  ;;  %v2597_v3 = vmul.f32 %v4687_v30, %v2581_v59  ;;  %v2782_v24 = vadd.f32 %v4733_v13, %v2753_v47  ;;  %v4759_v40 = vadd.f32 %v2504_v52, %v4672_v21 }
 0x337   :  { %v2584_v28 = vadd.f32 0.1302272, %v2568_v48  ;;  %v2598_v4 = vmul.f32 %v4693_v32, %v2582_v2  ;;  %v2783_v5 = vadd.f32 %v4722_v42, %v2754_v45  ;;  %v2797_v8 = vmul.f32 %v4693_v32, %v2781_v0 }
 0x338   :  { %v2599_v9 = vmul.f32 %v4699_v38, %v2583_v1  ;;  %v2613_v16 = vadd.f32 0.41586363, %v2597_v3  ;;  %v2796_v25 = vmul.f32 %v4687_v30, %v2780_v17  ;;  %v2798_v14 = vmul.f32 %v4699_v38, %v2782_v24 }
 0x339   :  { %v2600_v18 = vmul.f32 %v4705_v15, %v2584_v28  ;;  %v2614_v20 = vadd.f32 0.41586363, %v2598_v4  ;;  %v2799_v7 = vmul.f32 %v4705_v15, %v2783_v5  ;;  %v2825_v31 = vadd.f32 %v4742_v19, %v2797_v8 }
 0x33a   :  { %v2615_v35 = vadd.f32 0.41586363, %v2599_v9  ;;  %v2629_v33 = vmul.f32 %v4687_v30, %v2613_v16  ;;  %v4774_v56 = vadd.f32 %v2506_v58, %v4675_v22  ;;  %v4777_v51 = vadd.f32 %v2508_v62, %v4672_v21 }
 0x33b   :  { %v2514_v49 = vpop.f32.mrb[24].mxu0  ;;  %v2616_v46 = vadd.f32 0.41586363, %v2600_v18  ;;  %v2630_v41 = vmul.f32 %v4693_v32, %v2614_v20  ;;  %v2827_v6 = vadd.f32 %v4742_v19, %v2799_v7  ;;  %v2841_v23 = vmul.f32 %v4693_v32, %v2825_v31 }
 0x33c   :  { %v4763_v10 = vpop.f32.mrb[25].mxu0  ;;  %v2631_v54 = vmul.f32 %v4699_v38, %v2615_v35  ;;  %v2645_v39 = vadd.f32 0.5080497, %v2629_v33  ;;  %v4782_v11 = vadd.f32 %v2510_v63, %v4675_v22  ;;  %v4786_v59 = vadd.f32 %v2514_v49, %v4672_v21 }
 0x33d   :  { %v4768_v50 = vpop.f32.mrb[26].mxu0  ;;  %v2632_v36 = vmul.f32 %v4705_v15, %v2616_v46  ;;  %v2646_v34 = vadd.f32 0.5080497, %v2630_v41  ;;  %v2843_v55 = vmul.f32 %v4705_v15, %v2827_v6  ;;  %v2857_v53 = vand.u32 2147483647, %v2841_v23 }
 0x33e   :  { %v4779_v52 = vpop.f32.mrb[27].mxu0  ;;  %v2647_v57 = vadd.f32 0.5080497, %v2631_v54  ;;  %v4789_v58 = vmul.f32 %v4687_v30, %v2645_v39  ;;  %v2824_v62 = vadd.f32 %v4754_v12, %v2796_v25  ;;  %v2826_v47 = vadd.f32 %v4754_v12, %v2798_v14 }
 0x33f   :  { %v2648_v43 = vadd.f32 0.5080497, %v2632_v36  ;;  %v2662_v61 = vmul.f32 %v4693_v32, %v2646_v34  ;;  %v2859_v44 = vand.u32 2147483647, %v2843_v55  ;;  %v2873_v60 = vadd.f32 1.0, %v2857_v53 }
 0x340   :  { %v4794_v45 = vmul.f32 %v4699_v38, %v2647_v57  ;;  %v2840_v32 = vmul.f32 %v4687_v30, %v2824_v62  ;;  %v2538_v0 = vmul.f32 0.0029028396, %v4774_v56  ;;  %v2842_v28 = vmul.f32 %v4699_v38, %v2826_v47 }
 0x341   :  { %v2664_v48 = vmul.f32 %v4705_v15, %v2648_v43  ;;  %v2875_v2 = vadd.f32 1.0, %v2859_v44  ;;  %v2678_v63 = vadd.f32 -0.0012423594, %v2662_v61  ;;  %4178 = vrcp.f32 %v2873_v60 }
 0x342   :  { %v2540_v4 = vmul.f32 0.0029028396, %v4782_v11  ;;  %v2856_v8 = vand.u32 2147483647, %v2840_v32  ;;  %v2554_v9 = vadd.f32 0.0243559, %v2538_v0  ;;  %v2711_v16 = vmul.f32 %v4774_v56, %v4684_v27 }
 0x343   :  { %v2524_v1 = vpop.f32.mrb[28].mxu0  ;;  %v2680_v3 = vadd.f32 -0.0012423594, %v2664_v48  ;;  %4180 = vrcp.f32 %v2875_v2  ;;  %v2858_v18 = vand.u32 2147483647, %v2842_v28  ;;  %v2713_v38 = vmul.f32 %v4782_v11, %v4684_v27 }
 0x344   :  { %v4802_v15 = vadd.f32 %v2524_v1, %v4672_v21  ;;  %v2526_v5 = vpop.f32.mrb[29].mxu0  ;;  %v2556_v20 = vadd.f32 0.0243559, %v2540_v4  ;;  %v2872_v31 = vadd.f32 1.0, %v2856_v8  ;;  %v2570_v35 = vmul.f32 %v4774_v56, %v2554_v9 }
 0x345   :  { %v4807_v30 = vadd.f32 %v2526_v5, %v4675_v22  ;;  %v2528_v17 = vpop.f32.mrb[30].mxu0  ;;  %v2740_v33 = vadd.f32 %v4696_v37, %v2711_v16  ;;  %v2874_v46 = vadd.f32 1.0, %v2858_v18  ;;  %v2742_v6 = vadd.f32 %v4696_v37, %v2713_v38 }
 0x346   :  { %v4812_v7 = vadd.f32 %v2528_v17, %v4672_v21  ;;  %v2530_v24 = vpop.f32.mrb[31].mxu0  ;;  %v2572_v41 = vmul.f32 %v4782_v11, %v2556_v20  ;;  %4182 = vrcp.f32 %v2872_v31  ;;  %v2586_v23 = vadd.f32 0.1302272, %v2570_v35 }
 0x347   :  { %v4817_v49 = vadd.f32 %v2530_v24, %v4675_v22  ;;  %v2756_v54 = vmul.f32 %v4774_v56, %v2740_v33  ;;  %v2537_v39 = vmul.f32 0.0029028396, %v4759_v40  ;;  %4184 = vrcp.f32 %v2874_v46 }
 0x348   :  { %v2588_v25 = vadd.f32 0.1302272, %v2572_v41  ;;  %v2758_v36 = vmul.f32 %v4782_v11, %v2742_v6  ;;  %v2539_v34 = vmul.f32 0.0029028396, %v4777_v51  ;;  %v2602_v55 = vmul.f32 %v4774_v56, %v2586_v23 }
 0x349   :  { %v2785_v14 = vadd.f32 %v4722_v42, %v2756_v54  ;;  %v2553_v53 = vadd.f32 0.0243559, %v2537_v39  ;;  %v2710_v57 = vmul.f32 %v4759_v40, %v4681_v26  ;;  %v2712_v60 = vmul.f32 %v4777_v51, %v4681_v26 }
 0x34a   :  { %v2604_v43 = vmul.f32 %v4782_v11, %v2588_v25  ;;  %v2787_v61 = vadd.f32 %v4722_v42, %v2758_v36  ;;  %v2555_v44 = vadd.f32 0.0243559, %v2539_v34  ;;  %v2618_v48 = vadd.f32 0.41586363, %v2602_v55 }
 0x34b   :  { %v4179_v62 = vpop.eup %4178  ;;  %v2801_v2 = vmul.f32 %v4774_v56, %v2785_v14  ;;  %v2569_v47 = vmul.f32 %v4759_v40, %v2553_v53  ;;  %v2739_v32 = vadd.f32 %v4690_v29, %v2710_v57  ;;  %v2741_v24 = vadd.f32 %v4690_v29, %v2712_v60 }
 0x34c   :  { %v2905_v1 = vmul.f32 %v4179_v62, %v2678_v63  ;;  %v2620_v28 = vadd.f32 0.41586363, %v2604_v43  ;;  %v2803_v4 = vmul.f32 %v4782_v11, %v2787_v61  ;;  %v2571_v5 = vmul.f32 %v4777_v51, %v2555_v44 }
 0x34d   :  { %v4181_v0 = vpop.eup %4180  ;;  %v2634_v9 = vmul.f32 %v4774_v56, %v2618_v48  ;;  %v2829_v16 = vadd.f32 %v4742_v19, %v2801_v2  ;;  %v2585_v17 = vadd.f32 0.1302272, %v2569_v47  ;;  %v2755_v6 = vmul.f32 %v4759_v40, %v2739_v32 }
 0x34e   :  { %v2907_v8 = vmul.f32 %v4181_v0, %v2680_v3  ;;  %v2636_v18 = vmul.f32 %v4782_v11, %v2620_v28  ;;  %v2831_v20 = vadd.f32 %v4742_v19, %v2803_v4  ;;  %v2587_v38 = vadd.f32 0.1302272, %v2571_v5 }
 0x34f   :  { %v2650_v63 = vadd.f32 0.5080497, %v2634_v9  ;;  %v2845_v35 = vmul.f32 %v4774_v56, %v2829_v16  ;;  %v2601_v33 = vmul.f32 %v4759_v40, %v2585_v17  ;;  %v2677_v3 = vadd.f32 -0.0012423594, %v4789_v58 }
 0x350   :  { %v2921_v31 = vpack.c.bf16 %v2907_v8, %v2905_v1  ;;  %v2652_v46 = vadd.f32 0.5080497, %v2636_v18  ;;  %v2847_v41 = vmul.f32 %v4782_v11, %v2831_v20  ;;  %v4183_v23 = vpop.eup %4182  ;;  %v2679_v54 = vadd.f32 -0.0012423594, %v4794_v45 }
 0x351   :  { %v2861_v39 = vand.u32 2147483647, %v2845_v35  ;;  %v2603_v25 = vmul.f32 %v4777_v51, %v2587_v38  ;;  %v2757_v36 = vmul.f32 %v4777_v51, %v2741_v24  ;;  %v4185_v34 = vpop.eup %4184  ;;  %v4853_v55 = vadd.f32 %v4763_v10, %v4675_v22 }
 0x352   :  { %3095 = vmatprep.mubr.bf16.mxu0 %v2921_v31  ;;  %v4857_v58 = vadd.f32 %v4779_v52, %v4675_v22  ;;  %v2863_v14 = vand.u32 2147483647, %v2847_v41  ;;  %v2617_v53 = vadd.f32 0.41586363, %v2601_v33  ;;  %v2904_v57 = vmul.f32 %v4183_v23, %v2677_v3 }
 0x353   :  { %v2906_v43 = vmul.f32 %v4185_v34, %v2679_v54  ;;  %v2666_v45 = vmul.f32 %v4774_v56, %v2650_v63  ;;  %v2877_v61 = vadd.f32 1.0, %v2861_v39  ;;  %v4862_v44 = vadd.f32 %v4768_v50, %v4672_v21 }
 0x354   :  { %v2668_v60 = vmul.f32 %v4782_v11, %v2652_v46  ;;  %v2879_v62 = vadd.f32 1.0, %v2863_v14  ;;  %v2784_v10 = vadd.f32 %v4733_v13, %v2755_v6  ;;  %v2619_v22 = vadd.f32 0.41586363, %v2603_v25 }
 0x355   :  { %v2920_v48 = vpack.c.bf16 %v2906_v43, %v2904_v57  ;;  %4186 = vrcp.f32 %v2877_v61  ;;  %v2786_v52 = vadd.f32 %v4733_v13, %v2757_v36  ;;  %v2633_v2 = vmul.f32 %v4759_v40, %v2617_v53 }
 0x356   :  { %4188 = vrcp.f32 %v2879_v62  ;;  %v2800_v56 = vmul.f32 %v4759_v40, %v2784_v10  ;;  %v2542_v47 = vmul.f32 0.0029028396, %v4853_v55  ;;  %v2682_v21 = vadd.f32 -0.0012423594, %v2666_v45 }
 0x357   :  { %3096 = vmatmul.mubr.bf16.vlgmr.msra.gmra.mrb[32].mxu0 %v2920_v48  ;;  %v2802_v50 = vmul.f32 %v4777_v51, %v2786_v52  ;;  %v2544_v11 = vmul.f32 0.0029028396, %v4857_v58  ;;  %v2715_v32 = vmul.f32 %v4853_v55, %v4684_v27  ;;  %v2684_v0 = vadd.f32 -0.0012423594, %v2668_v60 }
 0x358   :  { %v2828_v1 = vadd.f32 %v4754_v12, %v2800_v56  ;;  %v2558_v28 = vadd.f32 0.0243559, %v2542_v47  ;;  %v2717_v4 = vmul.f32 %v4857_v58, %v4684_v27  ;;  %v2635_v5 = vmul.f32 %v4777_v51, %v2619_v22 }
 0x359   :  { %v2830_v8 = vadd.f32 %v4754_v12, %v2802_v50  ;;  %v2560_v9 = vadd.f32 0.0243559, %v2544_v11  ;;  %v2744_v16 = vadd.f32 %v4696_v37, %v2715_v32  ;;  %v2649_v17 = vadd.f32 0.5080497, %v2633_v2 }
 0x35a   :  { %v2844_v18 = vmul.f32 %v4759_v40, %v2828_v1  ;;  %v2574_v20 = vmul.f32 %v4853_v55, %v2558_v28  ;;  %v2746_v38 = vadd.f32 %v4696_v37, %v2717_v4  ;;  %v2541_v35 = vmul.f32 0.0029028396, %v4786_v59 }
 0x35b   :  { %v2846_v24 = vmul.f32 %v4777_v51, %v2830_v8  ;;  %v2576_v31 = vmul.f32 %v4857_v58, %v2560_v9  ;;  %v2760_v63 = vmul.f32 %v4853_v55, %v2744_v16  ;;  %v2543_v41 = vmul.f32 0.0029028396, %v4862_v44 }
 0x35c   :  { %v2860_v33 = vand.u32 2147483647, %v2844_v18  ;;  %v2590_v3 = vadd.f32 0.1302272, %v2574_v20  ;;  %v2762_v46 = vmul.f32 %v4857_v58, %v2746_v38  ;;  %v2557_v39 = vadd.f32 0.0243559, %v2541_v35 }
 0x35d   :  { %v2862_v6 = vand.u32 2147483647, %v2846_v24  ;;  %v2592_v23 = vadd.f32 0.1302272, %v2576_v31  ;;  %v2789_v54 = vadd.f32 %v4722_v42, %v2760_v63  ;;  %v2559_v14 = vadd.f32 0.0243559, %v2543_v41 }
 0x35e   :  { %v2876_v25 = vadd.f32 1.0, %v2860_v33  ;;  %v2606_v36 = vmul.f32 %v4853_v55, %v2590_v3  ;;  %v2791_v34 = vadd.f32 %v4722_v42, %v2762_v46  ;;  %v2651_v57 = vadd.f32 0.5080497, %v2635_v5 }
 0x35f   :  { %v4187_v53 = vpop.eup %4186  ;;  %v2878_v43 = vadd.f32 1.0, %v2862_v6  ;;  %v2608_v45 = vmul.f32 %v4857_v58, %v2592_v23  ;;  %v2805_v61 = vmul.f32 %v4853_v55, %v2789_v54  ;;  %v2573_v48 = vmul.f32 %v4786_v59, %v2557_v39 }
 0x360   :  { %v4189_v60 = vpop.eup %4188  ;;  %4190 = vrcp.f32 %v2876_v25  ;;  %v2622_v62 = vadd.f32 0.41586363, %v2606_v36  ;;  %v2807_v10 = vmul.f32 %v4857_v58, %v2791_v34  ;;  %v2909_v22 = vmul.f32 %v4187_v53, %v2682_v21 }
 0x361   :  { %v2911_v52 = vmul.f32 %v4189_v60, %v2684_v0  ;;  %4192 = vrcp.f32 %v2878_v43  ;;  %v2833_v2 = vadd.f32 %v4742_v19, %v2805_v61  ;;  %v2624_v56 = vadd.f32 0.41586363, %v2608_v45 }
 0x362   :  { %v2835_v47 = vadd.f32 %v4742_v19, %v2807_v10  ;;  %v2575_v50 = vmul.f32 %v4862_v44, %v2559_v14  ;;  %v2638_v32 = vmul.f32 %v4853_v55, %v2622_v62  ;;  %v2714_v28 = vmul.f32 %v4786_v59, %v4681_v26 }
 0x363   :  { %v2923_v11 = vpack.c.bf16 %v2911_v52, %v2909_v22  ;;  %v2849_v1 = vmul.f32 %v4853_v55, %v2833_v2  ;;  %v2665_v4 = vmul.f32 %v4759_v40, %v2649_v17  ;;  %v2589_v0 = vadd.f32 0.1302272, %v2573_v48 }
 0x364   :  { %v2851_v21 = vmul.f32 %v4857_v58, %v2835_v47  ;;  %v2667_v5 = vmul.f32 %v4777_v51, %v2651_v57  ;;  %v2716_v9 = vmul.f32 %v4862_v44, %v4681_v26  ;;  %v2743_v16 = vadd.f32 %v4690_v29, %v2714_v28 }
 0x365   :  { %3103 = vmatprep.mubr.bf16.mxu0 %v2923_v11  ;;  %v2865_v8 = vand.u32 2147483647, %v2849_v1  ;;  %v2640_v18 = vmul.f32 %v4857_v58, %v2624_v56  ;;  %v2591_v38 = vadd.f32 0.1302272, %v2575_v50  ;;  %v2654_v24 = vadd.f32 0.5080497, %v2638_v32 }
 0x366   :  { %v2867_v20 = vand.u32 2147483647, %v2851_v21  ;;  %v2745_v40 = vadd.f32 %v4690_v29, %v2716_v9  ;;  %v2759_v17 = vmul.f32 %v4786_v59, %v2743_v16  ;;  %v2681_v63 = vadd.f32 -0.0012423594, %v2665_v4 }
 0x367   :  { %v2881_v31 = vadd.f32 1.0, %v2865_v8  ;;  %v2605_v51 = vmul.f32 %v4786_v59, %v2589_v0  ;;  %v2683_v33 = vadd.f32 -0.0012423594, %v2667_v5  ;;  %v2656_v6 = vadd.f32 0.5080497, %v2640_v18 }
 0x368   :  { %v2883_v35 = vadd.f32 1.0, %v2867_v20  ;;  %v2761_v3 = vmul.f32 %v4862_v44, %v2745_v40  ;;  %v2788_v46 = vadd.f32 %v4733_v13, %v2759_v17  ;;  %v2607_v23 = vmul.f32 %v4862_v44, %v2591_v38 }
 0x369   :  { %4194 = vrcp.f32 %v2881_v31  ;;  %v2546_v54 = vmul.f32 0.0029028396, %v4807_v30  ;;  %v2670_v25 = vmul.f32 %v4853_v55, %v2654_v24  ;;  %v2548_v14 = vmul.f32 0.0029028396, %v4817_v49 }
 0x36a   :  { %v4191_v41 = vpop.eup %4190  ;;  %4196 = vrcp.f32 %v2883_v35  ;;  %v2790_v36 = vadd.f32 %v4733_v13, %v2761_v3  ;;  %v2804_v34 = vmul.f32 %v4786_v59, %v2788_v46  ;;  %v2621_v43 = vadd.f32 0.41586363, %v2605_v51 }
 0x36b   :  { %v4193_v39 = vpop.eup %4192  ;;  %v2908_v53 = vmul.f32 %v4191_v41, %v2681_v63  ;;  %v2562_v45 = vadd.f32 0.0243559, %v2546_v54  ;;  %v2564_v62 = vadd.f32 0.0243559, %v2548_v14  ;;  %v2719_v10 = vmul.f32 %v4807_v30, %v4684_v27 }
 0x36c   :  { %v2910_v57 = vmul.f32 %v4193_v39, %v2683_v33  ;;  %v2806_v61 = vmul.f32 %v4862_v44, %v2790_v36  ;;  %v2832_v60 = vadd.f32 %v4754_v12, %v2804_v34  ;;  %v2672_v55 = vmul.f32 %v4857_v58, %v2656_v6 }
 0x36d   :  { %v2623_v22 = vadd.f32 0.41586363, %v2607_v23  ;;  %v2578_v52 = vmul.f32 %v4807_v30, %v2562_v45  ;;  %v2580_v47 = vmul.f32 %v4817_v49, %v2564_v62  ;;  %v2721_v50 = vmul.f32 %v4817_v49, %v4684_v27 }
 0x36e   :  { %v2922_v48 = vpack.c.bf16 %v2910_v57, %v2908_v53  ;;  %v2834_v2 = vadd.f32 %v4754_v12, %v2806_v61  ;;  %v2848_v56 = vmul.f32 %v4786_v59, %v2832_v60  ;;  %v2686_v11 = vadd.f32 -0.0012423594, %v2670_v25 }
 0x36f   :  { %v2594_v32 = vadd.f32 0.1302272, %v2578_v52  ;;  %v2748_v1 = vadd.f32 %v4696_v37, %v2719_v10  ;;  %v2545_v28 = vmul.f32 0.0029028396, %v4802_v15  ;;  %v2637_v58 = vmul.f32 %v4786_v59, %v2621_v43 }
 0x370   :  { %3104 = vmatmul.mubr.bf16.gmra.mrb[36].mxu0 %v2922_v48  ;;  %v2850_v4 = vmul.f32 %v4862_v44, %v2834_v2  ;;  %v2864_v21 = vand.u32 2147483647, %v2848_v56  ;;  %v2750_v0 = vadd.f32 %v4696_v37, %v2721_v50  ;;  %v2688_v5 = vadd.f32 -0.0012423594, %v2672_v55 }
 0x371   :  { %v2639_v8 = vmul.f32 %v4862_v44, %v2623_v22  ;;  %v2764_v9 = vmul.f32 %v4807_v30, %v2748_v1  ;;  %v2547_v27 = vmul.f32 0.0029028396, %v4812_v7  ;;  %v2596_v38 = vadd.f32 0.1302272, %v2580_v47 }
 0x372   :  { %v2866_v18 = vand.u32 2147483647, %v2850_v4  ;;  %v2880_v20 = vadd.f32 1.0, %v2864_v21  ;;  %v2766_v24 = vmul.f32 %v4817_v49, %v2750_v0  ;;  %v2610_v17 = vmul.f32 %v4807_v30, %v2594_v32 }
 0x373   :  { %v4195_v16 = vpop.eup %4194  ;;  %v2793_v63 = vadd.f32 %v4722_v42, %v2764_v9  ;;  %v2561_v37 = vadd.f32 0.0243559, %v2545_v28  ;;  %v2563_v33 = vadd.f32 0.0243559, %v2547_v27  ;;  %v2653_v6 = vadd.f32 0.5080497, %v2637_v58 }
 0x374   :  { %v4197_v31 = vpop.eup %4196  ;;  %v2913_v40 = vmul.f32 %v4195_v16, %v2686_v11  ;;  %v2882_v51 = vadd.f32 1.0, %v2866_v18  ;;  %4198 = vrcp.f32 %v2880_v20  ;;  %v2795_v3 = vadd.f32 %v4722_v42, %v2766_v24 }
 0x375   :  { %v2915_v35 = vmul.f32 %v4197_v31, %v2688_v5  ;;  %v2809_v46 = vmul.f32 %v4807_v30, %v2793_v63  ;;  %v2612_v23 = vmul.f32 %v4817_v49, %v2596_v38  ;;  %v2655_v54 = vadd.f32 0.5080497, %v2639_v8 }
 0x376   :  { %4200 = vrcp.f32 %v2882_v51  ;;  %v2626_v39 = vadd.f32 0.41586363, %v2610_v17  ;;  %v2811_v25 = vmul.f32 %v4817_v49, %v2795_v3  ;;  %v2577_v34 = vmul.f32 %v4802_v15, %v2561_v37 }
 0x377   :  { %v2925_v41 = vpack.c.bf16 %v2915_v35, %v2913_v40  ;;  %v2837_v36 = vadd.f32 %v4742_v19, %v2809_v46  ;;  %v2579_v14 = vmul.f32 %v4812_v7, %v2563_v33  ;;  %v2718_v42 = vmul.f32 %v4802_v15, %v4681_v26 }
 0x378   :  { %v2720_v53 = vmul.f32 %v4812_v7, %v4681_v26  ;;  %v2839_v57 = vadd.f32 %v4742_v19, %v2811_v25  ;;  %v2669_v45 = vmul.f32 %v4786_v59, %v2653_v6  ;;  %v2628_v61 = vadd.f32 0.41586363, %v2612_v23 }
 0x379   :  { %3111 = vmatprep.mubr.bf16.mxu1 %v2925_v41  ;;  %v2853_v43 = vmul.f32 %v4807_v30, %v2837_v36  ;;  %v2747_v60 = vadd.f32 %v4690_v29, %v2718_v42  ;;  %v2671_v10 = vmul.f32 %v4862_v44, %v2655_v54  ;;  %v2642_v48 = vmul.f32 %v4807_v30, %v2626_v39 }
 0x37a   :  { %v2749_v62 = vadd.f32 %v4690_v29, %v2720_v53  ;;  %v2855_v55 = vmul.f32 %v4817_v49, %v2839_v57  ;;  %v2593_v52 = vadd.f32 0.1302272, %v2577_v34  ;;  %v2595_v26 = vadd.f32 0.1302272, %v2579_v14 }
 0x37b   :  { %v2869_v22 = vand.u32 2147483647, %v2853_v43  ;;  %v2763_v19 = vmul.f32 %v4802_v15, %v2747_v60  ;;  %v2685_v50 = vadd.f32 -0.0012423594, %v2669_v45  ;;  %v2644_v11 = vmul.f32 %v4817_v49, %v2628_v61  ;;  %v4984_v60 = vld [vmem:[%s5012_s6] ss:$0 sm:$0xff] }
 0x37c   :  { %v2765_v2 = vmul.f32 %v4812_v7, %v2749_v62  ;;  %v2871_v56 = vand.u32 2147483647, %v2855_v55  ;;  %v2687_v32 = vadd.f32 -0.0012423594, %v2671_v10  ;;  %v2658_v1 = vadd.f32 0.5080497, %v2642_v48 }
 0x37d   :  { %v2885_v59 = vadd.f32 1.0, %v2869_v22  ;;  %v2792_v29 = vadd.f32 %v4733_v13, %v2763_v19  ;;  %v2609_v4 = vmul.f32 %v4802_v15, %v2593_v52  ;;  %v2611_v21 = vmul.f32 %v4812_v7, %v2595_v26 }
 0x37e   :  { %v4199_v47 = vpop.eup %4198  ;;  %v2794_v44 = vadd.f32 %v4733_v13, %v2765_v2  ;;  %v2887_v28 = vadd.f32 1.0, %v2871_v56  ;;  %v2660_v27 = vadd.f32 0.5080497, %v2644_v11  ;;  %v2674_v20 = vmul.f32 %v4807_v30, %v2658_v1 }
 0x37f   :  { %4202 = vrcp.f32 %v2885_v59  ;;  %v2808_v0 = vmul.f32 %v4802_v15, %v2792_v29  ;;  %v2912_v8 = vmul.f32 %v4199_v47, %v2685_v50  ;;  %v2625_v38 = vadd.f32 0.41586363, %v2609_v4 }
 0x380   :  { %v4201_v58 = vpop.eup %4200  ;;  %v2810_v5 = vmul.f32 %v4812_v7, %v2794_v44  ;;  %4204 = vrcp.f32 %v2887_v28  ;;  %v2627_v24 = vadd.f32 0.41586363, %v2611_v21  ;;  %v2676_v17 = vmul.f32 %v4817_v49, %v2660_v27 }
 0x381   :  { %v2914_v9 = vmul.f32 %v4201_v58, %v2687_v32  ;;  %v2836_v16 = vadd.f32 %v4754_v12, %v2808_v0  ;;  %v2690_v35 = vadd.f32 -0.0012423594, %v2674_v20  ;;  %v2641_v51 = vmul.f32 %v4802_v15, %v2625_v38 }
 0x382   :  { %v2838_v13 = vadd.f32 %v4754_v12, %v2810_v5  ;;  %v2643_v33 = vmul.f32 %v4812_v7, %v2627_v24  ;;  %v2692_v30 = vadd.f32 -0.0012423594, %v2676_v17 }
 0x383   :  { %v2924_v18 = vpack.c.bf16 %v2914_v9, %v2912_v8  ;;  %v2852_v31 = vmul.f32 %v4802_v15, %v2836_v16  ;;  %v2657_v54 = vadd.f32 0.5080497, %v2641_v51 }
 0x384   :  { %v2854_v40 = vmul.f32 %v4812_v7, %v2838_v13  ;;  %v2659_v39 = vadd.f32 0.5080497, %v2643_v33 }
 0x385   :  { %3112 = vmatmul.mubr.bf16.vlgmr.msra.gmra.mrb[32].mxu1 %v2924_v18  ;;  %v2868_v63 = vand.u32 2147483647, %v2852_v31  ;;  %v2673_v49 = vmul.f32 %v4802_v15, %v2657_v54 }
 0x386   :  { %v2870_v37 = vand.u32 2147483647, %v2854_v40  ;;  %v2675_v36 = vmul.f32 %v4812_v7, %v2659_v39 }
 0x387   :  { %v2884_v12 = vadd.f32 1.0, %v2868_v63  ;;  %v2689_v14 = vadd.f32 -0.0012423594, %v2673_v49 }
 0x388   :  { %v2886_v3 = vadd.f32 1.0, %v2870_v37  ;;  %v2691_v42 = vadd.f32 -0.0012423594, %v2675_v36 }
 0x389   :  { %v4203_v46 = vpop.eup %4202  ;;  %4206 = vrcp.f32 %v2884_v12 }
 0x38a   :  { %v2917_v41 = vmul.f32 %v4203_v46, %v2690_v35  ;;  %v4205_v6 = vpop.eup %4204  ;;  %4208 = vrcp.f32 %v2886_v3 }
 0x38b   :  { %v2919_v23 = vmul.f32 %v4205_v6, %v2692_v30 }
 0x38d   :  { %v2927_v25 = vpack.c.bf16 %v2919_v23, %v2917_v41 }
 0x38f   :  { %3119 = vmatprep.mubr.bf16.mxu1 %v2927_v25 }
 0x393   :  { %v4207_v34 = vpop.eup %4206 }
 0x394   :  { %v4209_v53 = vpop.eup %4208  ;;  %v2916_v57 = vmul.f32 %v4207_v34, %v2689_v14 }
 0x395   :  { %v2918_v43 = vmul.f32 %v4209_v53, %v2691_v42 }
 0x397   :  { %v2926_v45 = vpack.c.bf16 %v2918_v43, %v2916_v57 }
 0x399   :  { %3120 = vmatmul.mubr.bf16.gmra.mrb[36].mxu1 %v2926_v45 }
 0x42a   :  { %v3558_v61 = vpop.f32.mrb[32].mxu0 }
 0x42b   :  { %v3559_v62 = vpop.f32.mrb[33].mxu0 }
 0x42c   :  { %v3560_v10 = vadd.f32 %v3559_v62, %v3558_v61  ;;  %v3561_v48 = vpop.f32.mrb[34].mxu0 }
 0x42d   :  { %v3562_v15 = vpop.f32.mrb[35].mxu0 }
 0x42e   :  { %v3098_v7 = vadd.f32 %v3560_v10, %v4984_v60  ;;  %v3563_v55 = vadd.f32 %v3562_v15, %v3561_v48 }
 0x430   :  { %v3128_v22 = vsub.f32 0.0, %v3098_v7  ;;  %v3101_v52 = vadd.f32 %v3563_v55, %v4984_v60 }
 0x432   :  { %v3136_v26 = vmul.f32 1.442695, %v3128_v22  ;;  %v3129_v19 = vsub.f32 0.0, %v3101_v52 }
 0x434   :  { %4210 = vpow2.f32 %v3136_v26  ;;  %v3138_v2 = vmul.f32 1.442695, %v3129_v19 }
 0x436   :  { %4212 = vpow2.f32 %v3138_v2 }
 0x43e   :  { %v4211_v56 = vpop.eup %4210 }
 0x43f   :  { %v3152_v59 = vadd.f32 1.0, %v4211_v56 }
 0x440   :  { %v4213_v47 = vpop.eup %4212 }
 0x441   :  { %v3153_v50 = vadd.f32 1.0, %v4213_v47  ;;  %4214 = vrcp.f32 %v3152_v59 }
 0x443   :  { %4216 = vrcp.f32 %v3153_v50  ;;  %v3564_v11 = vpop.f32.mrb[36].mxu0 }
 0x444   :  { %v3565_v29 = vpop.f32.mrb[37].mxu0 }
 0x445   :  { %v3566_v44 = vadd.f32 %v3565_v29, %v3564_v11  ;;  %v3567_v32 = vpop.f32.mrb[38].mxu0 }
 0x446   :  { %v3568_v1 = vpop.f32.mrb[39].mxu0 }
 0x447   :  { %v3106_v28 = vadd.f32 %v3566_v44, %v4984_v60  ;;  %v3569_v58 = vadd.f32 %v3568_v1, %v3567_v32 }
 0x449   :  { %v3130_v4 = vsub.f32 0.0, %v3106_v28  ;;  %v3109_v21 = vadd.f32 %v3569_v58, %v4984_v60 }
 0x44b   :  { %v3140_v0 = vmul.f32 1.442695, %v3130_v4  ;;  %v3131_v5 = vsub.f32 0.0, %v3109_v21  ;;  %v4215_v8 = vpop.eup %4214 }
 0x44d   :  { %v4217_v9 = vpop.eup %4216  ;;  %4218 = vpow2.f32 %v3140_v0  ;;  %v3142_v27 = vmul.f32 1.442695, %v3131_v5 }
 0x44e   :  { %v3522_v16 = vpack.c.bf16 %v4217_v9, %v4215_v8 }
 0x44f   :  { %4220 = vpow2.f32 %v3142_v27 }
 0x450   :  { %3523 = vst [vmem:[%s5014_s8] sm:$0xff] %v3522_v16  }
 0x457   :  { %v4219_v13 = vpop.eup %4218 }
 0x458   :  { %v3154_v18 = vadd.f32 1.0, %v4219_v13  ;;  %v3570_v38 = vpop.f32.mrb[32].mxu1 }
 0x459   :  { %v4221_v20 = vpop.eup %4220  ;;  %v3571_v31 = vpop.f32.mrb[33].mxu1 }
 0x45a   :  { %v3155_v24 = vadd.f32 1.0, %v4221_v20  ;;  %4222 = vrcp.f32 %v3154_v18  ;;  %v3572_v40 = vadd.f32 %v3571_v31, %v3570_v38  ;;  %v3573_v17 = vpop.f32.mrb[34].mxu1 }
 0x45b   :  { %v3574_v63 = vpop.f32.mrb[35].mxu1 }
 0x45c   :  { %4224 = vrcp.f32 %v3155_v24  ;;  %v3114_v37 = vadd.f32 %v3572_v40, %v4984_v60  ;;  %v3575_v35 = vadd.f32 %v3574_v63, %v3573_v17 }
 0x45e   :  { %v3132_v51 = vsub.f32 0.0, %v3114_v37  ;;  %v3117_v33 = vadd.f32 %v3575_v35, %v4984_v60 }
 0x460   :  { %v3144_v12 = vmul.f32 1.442695, %v3132_v51  ;;  %v3133_v3 = vsub.f32 0.0, %v3117_v33 }
 0x462   :  { %4226 = vpow2.f32 %v3144_v12  ;;  %v3146_v46 = vmul.f32 1.442695, %v3133_v3 }
 0x464   :  { %v4223_v30 = vpop.eup %4222  ;;  %4228 = vpow2.f32 %v3146_v46 }
 0x466   :  { %v4225_v41 = vpop.eup %4224 }
 0x467   :  { %v3527_v6 = vpack.c.bf16 %v4225_v41, %v4223_v30 }
 0x469   :  { %3539 = vst [vmem:[%s5014_s8 + $0x8] sm:$0xff] %v3527_v6  }
 0x46c   :  { %v4227_v23 = vpop.eup %4226  ;;  %v3576_v39 = vpop.f32.mrb[36].mxu1 }
 0x46d   :  { %v3156_v54 = vadd.f32 1.0, %v4227_v23  ;;  %v3577_v49 = vpop.f32.mrb[37].mxu1 }
 0x46e   :  { %v4229_v25 = vpop.eup %4228  ;;  %v3578_v34 = vadd.f32 %v3577_v49, %v3576_v39  ;;  %v3579_v14 = vpop.f32.mrb[38].mxu1 }
 0x46f   :  { %v3157_v36 = vadd.f32 1.0, %v4229_v25  ;;  %4230 = vrcp.f32 %v3156_v54  ;;  %v3580_v42 = vpop.f32.mrb[39].mxu1 }
 0x470   :  { %v3122_v53 = vadd.f32 %v3578_v34, %v4984_v60  ;;  %v3581_v57 = vadd.f32 %v3580_v42, %v3579_v14 }
 0x471   :  { %4232 = vrcp.f32 %v3157_v36 }
 0x472   :  { %v3134_v43 = vsub.f32 0.0, %v3122_v53  ;;  %v3125_v45 = vadd.f32 %v3581_v57, %v4984_v60 }
 0x474   :  { %v3148_v61 = vmul.f32 1.442695, %v3134_v43  ;;  %v3135_v62 = vsub.f32 0.0, %v3125_v45 }
 0x476   :  { %4234 = vpow2.f32 %v3148_v61  ;;  %v3150_v10 = vmul.f32 1.442695, %v3135_v62 }
 0x478   :  { %4236 = vpow2.f32 %v3150_v10 }
 0x479   :  { %v4231_v48 = vpop.eup %4230 }
 0x47b   :  { %v4233_v15 = vpop.eup %4232 }
 0x47c   :  { %v3532_v7 = vpack.c.bf16 %v4233_v15, %v4231_v48 }
 0x47e   :  { %3540 = vst [vmem:[%s5014_s8 + $0x10] sm:$0xff] %v3532_v7  }
 0x480   :  { %v4235_v55 = vpop.eup %4234 }
 0x481   :  { %v3158_v22 = vadd.f32 1.0, %v4235_v55 }
 0x482   :  { %v4237_v52 = vpop.eup %4236 }
 0x483   :  { %v3159_v26 = vadd.f32 1.0, %v4237_v52  ;;  %4238 = vrcp.f32 %v3158_v22 }
 0x485   :  { %4240 = vrcp.f32 %v3159_v26 }
 0x48d   :  { %v4239_v19 = vpop.eup %4238 }
 0x48f   :  { %v4241_v60 = vpop.eup %4240 }
 0x490   :  { %v3537_v2 = vpack.c.bf16 %v4241_v60, %v4239_v19 }
 0x492   :  { %3541 = vst [vmem:[%s5014_s8 + $0x18] sm:$0xff] %v3537_v2  }
 0x493   :  { %3212 = vsyncpa [#allocation3], 1 }
 0x494   :  { %3213 = vsyncpa [#allocation5], 1 }
 0x495   :  { %3214 = vsyncpa [#allocation8], 1 }

</bundles_post_ra>
